<compile_context>
chip_gen: v7x
topology: tpu7x:2x2x1
jax: 0.10.0
libtpu: 0.0.40
codegen_flags: <defaults>
</compile_context>

<pallas_src>
import functools
import math

import jax
import jax.numpy as jnp
from jax import lax
from jax.experimental import pallas as pl
from jax.experimental.pallas import tpu as pltpu


CFG = dict(vocab=30, hidden=32, layers=2, heads=2, inter=64, max_pos=16, type_vocab=2)

_MXU_DT = jnp.bfloat16   # MXU operand dtype (f32 accumulate); elementwise math stays f32
_NEG_INF = -1e9
_LANE = 128              # lane padding for the classifier output (dense vst)


def _layernorm(x, g, b, eps):
    mu = jnp.mean(x, axis=-1, keepdims=True)
    xc = x - mu
    var = jnp.mean(xc * xc, axis=-1, keepdims=True)
    return xc * lax.rsqrt(var + eps) * g + b


def _mm(a, b):
    """MXU matmul: bf16 operands, f32 accumulation."""
    return jnp.dot(a.astype(_MXU_DT), b.astype(_MXU_DT),
                   preferred_element_type=jnp.float32)


def _peptide_bert_kernel(ids_ref, mask_ref, word_ref, pos_type_ref,
                         eg_ref, eb_ref,
                         wqkv_ref, bqkv_ref, wo_ref, bo_ref,
                         g1_ref, be1_ref, w1_ref, b1_ref,
                         w2_ref, b2_ref, g2_ref, be2_ref,
                         wp_ref, bp_ref, wh_ref, bh_ref,
                         o_ref, *, B, S, H, nH, L, V, eps):
    dh = H // nH
    scale = 1.0 / math.sqrt(dh)

    # ---- embeddings: word gather via one-hot matmul (no XLA gather), + pos/type, LN ----
    ids = ids_ref[...]                                                   # [B*S, 1] int32
    iota = lax.broadcasted_iota(jnp.int32, (B * S, V), 1)
    onehot = jnp.where(iota == ids, 1.0, 0.0)                            # [B*S, V]
    emb = jnp.dot(onehot, word_ref[...], preferred_element_type=jnp.float32)   # [B*S, H]
    emb = emb.reshape(B, S, H) + pos_type_ref[...][None, :, :]           # + pos + type
    x = _layernorm(emb, eg_ref[...], eb_ref[...], eps).reshape(B * S, H)

    # ---- additive attention-mask bias, built ONCE (hoisted out of layer/head loops) ----
    m = mask_ref[...].astype(jnp.float32)                                # [B, S]
    bias = jnp.broadcast_to(((1.0 - m) * _NEG_INF)[:, None, :], (B, S, S))

    # Static unroll over layers (L=2 -> no vreg-pressure issue).
    # TODO(synk): for real ProtBERT dims (H=1024, I=4096, L=30) the stacked weights
    # must be streamed via an "arbitrary" grid axis over L (per-layer BlockSpecs,
    # double-buffered) instead of kept VMEM-resident, and the layer loop should be
    # a fori_loop / grid axis rather than a Python unroll.
    for l in range(L):
        # ---- self-attention: single fused QKV matmul ----
        qkv = _mm(x, wqkv_ref[l]) + bqkv_ref[l]                          # [B*S, 3H] f32
        heads = []
        # Heads stay an unrolled loop of 3-D leading-batch einsums (safe Mosaic path).
        for h in range(nH):
            q = qkv[:, h * dh:(h + 1) * dh].reshape(B, S, dh)
            k = qkv[:, H + h * dh:H + (h + 1) * dh].reshape(B, S, dh)
            v = qkv[:, 2 * H + h * dh:2 * H + (h + 1) * dh].reshape(B, S, dh)
            s = jnp.einsum("bqd,bkd->bqk", q.astype(_MXU_DT), k.astype(_MXU_DT),
                           preferred_element_type=jnp.float32) * scale
            s = s + bias                                                 # pre-built [B,S,S]
            s = s - jnp.max(s, axis=-1, keepdims=True)
            p = jnp.exp(s)
            p = p * pl.reciprocal(jnp.sum(p, axis=-1, keepdims=True), approx=True)
            ctx = jnp.einsum("bqk,bkd->bqd", p.astype(_MXU_DT), v.astype(_MXU_DT),
                             preferred_element_type=jnp.float32)         # [B, S, dh]
            heads.append(ctx.reshape(B * S, dh))
        ctx_all = heads[0] if nH == 1 else jnp.concatenate(heads, axis=-1)   # [B*S, H]
        attn = _mm(ctx_all, wo_ref[l]) + bo_ref[l]                       # ONE [H,H] matmul
        x = _layernorm(attn + x, g1_ref[l], be1_ref[l], eps)

        # ---- feed-forward ----
        ffn = _mm(x, w1_ref[l]) + b1_ref[l]
        ffn = jax.nn.gelu(ffn, approximate=True)   # tanh GELU (EUP); HF default is erf
        ffn = _mm(ffn, w2_ref[l]) + b2_ref[l]
        x = _layernorm(ffn + x, g2_ref[l], be2_ref[l], eps)

    # ---- pooler: CLS token -> dense -> tanh ----
    cls = x.reshape(B, S, H)[:, 0, :]                                    # [B, H]
    pooled = jnp.tanh(_mm(cls, wp_ref[...]) + bp_ref[...])

    # ---- head: Linear(H,1) + Sigmoid (weight lane-padded to 128 -> dense store) ----
    logit = _mm(pooled, wh_ref[...]) + bh_ref[...]                       # [B, 128]
    o_ref[...] = (1.0 / (1.0 + jnp.exp(-logit))).astype(o_ref.dtype)


def init_params(key, cfg):
    # TODO(synk): weights are synthetic (deterministic PRNG), not the pretrained
    # 'Rostlab/prot_bert_bfd' checkpoint; dropout is not modeled (inference only).
    H, I, L = cfg["hidden"], cfg["inter"], cfg["layers"]
    V, P, T = cfg["vocab"], cfg["max_pos"], cfg["type_vocab"]

    def nrm(k, shape):
        return jax.random.normal(k, shape, dtype=jnp.float32) * 0.02

    k = jax.random.split(key, 12)
    wh = nrm(k[11], (H, 1))
    wh_pad = jnp.zeros((H, _LANE), jnp.float32).at[:, :1].set(wh)        # lane-dense head
    return {
        "word_emb": nrm(k[0], (V, H)),
        "pos_emb": nrm(k[1], (P, H)),
        "type_emb": nrm(k[2], (T, H)),
        "emb_ln_g": jnp.ones((1, H), jnp.float32),
        "emb_ln_b": jnp.zeros((1, H), jnp.float32),
        # Encoder weights stacked on a leading layer axis; QKV fused to [H, 3H]
        # (columns = [Q | K | V], contiguous dh blocks per head). bf16 = MXU-native.
        "w_qkv": nrm(k[3], (L, H, 3 * H)).astype(_MXU_DT),
        "b_qkv": jnp.zeros((L, 1, 3 * H), jnp.float32),
        "w_o": nrm(k[4], (L, H, H)).astype(_MXU_DT),
        "b_o": jnp.zeros((L, 1, H), jnp.float32),
        "ln1_g": jnp.ones((L, 1, H), jnp.float32),
        "ln1_b": jnp.zeros((L, 1, H), jnp.float32),
        "w1": nrm(k[5], (L, H, I)).astype(_MXU_DT),
        "b1": jnp.zeros((L, 1, I), jnp.float32),
        "w2": nrm(k[6], (L, I, H)).astype(_MXU_DT),
        "b2": jnp.zeros((L, 1, H), jnp.float32),
        "ln2_g": jnp.ones((L, 1, H), jnp.float32),
        "ln2_b": jnp.zeros((L, 1, H), jnp.float32),
        "wp": nrm(k[7], (H, H)).astype(_MXU_DT),
        "bp": jnp.zeros((1, H), jnp.float32),
        "wh": wh_pad.astype(_MXU_DT),            # [H, 128]; real column is 0
        "bh": jnp.zeros((1, _LANE), jnp.float32),
    }


def peptide_bert_forward(params, input_ids, attention_mask, cfg):
    B, S = input_ids.shape
    H, nH, L, V = cfg["hidden"], cfg["heads"], cfg["layers"], cfg["vocab"]

    # Free wrapper-side prep (no per-token work): pos+type rows, flattened ids.
    pos_type = params["pos_emb"][:S] + params["type_emb"][0][None, :]    # [S, H]
    ids_flat = input_ids.astype(jnp.int32).reshape(B * S, 1)
    mask_i32 = attention_mask.astype(jnp.int32)

    args = (ids_flat, mask_i32,
            params["word_emb"], pos_type,
            params["emb_ln_g"], params["emb_ln_b"],
            params["w_qkv"], params["b_qkv"],
            params["w_o"], params["b_o"],
            params["ln1_g"], params["ln1_b"],
            params["w1"], params["b1"],
            params["w2"], params["b2"],
            params["ln2_g"], params["ln2_b"],
            params["wp"], params["bp"],
            params["wh"], params["bh"])

    kernel = functools.partial(_peptide_bert_kernel,
                               B=B, S=S, H=H, nH=nH, L=L, V=V, eps=1e-12)
    out = pl.pallas_call(
        kernel,
        out_shape=jax.ShapeDtypeStruct((B, _LANE), jnp.float32),
        in_specs=[pl.BlockSpec(memory_space=pltpu.MemorySpace.VMEM) for _ in args],
        out_specs=pl.BlockSpec(memory_space=pltpu.MemorySpace.VMEM),
    )(*args)
    return out[:, :1]   # real sigmoid output lives in lane 0; rest is padding


if __name__ == "__main__":
    key = jax.random.PRNGKey(0)
    k_param, k_ids = jax.random.split(key)

    B, S = 2, 8
    params = init_params(k_param, CFG)
    input_ids = jax.random.randint(k_ids, (B, S), 0, CFG["vocab"], dtype=jnp.int32)
    attention_mask = jnp.ones((B, S), dtype=jnp.int32).at[1, S - 2:].set(0)

    fwd = jax.jit(functools.partial(peptide_bert_forward, cfg=CFG))
    out = fwd(params, input_ids, attention_mask)
    out = jax.block_until_ready(out)
    assert out.shape == (B, 1) and out.dtype == jnp.float32
    assert bool(jnp.all(jnp.isfinite(out)))
    print("KERNEL_OK")
</pallas_src>

<mosaic_0001>
module attributes {stable_mosaic.version = 11 : i64} {
  func.func @_peptide_bert_kernel(%arg0: memref<16x1xi32, #tpu.memory_space<vmem>>, %arg1: memref<2x8xi32, #tpu.memory_space<vmem>>, %arg2: memref<30x32xf32, #tpu.memory_space<vmem>>, %arg3: memref<8x32xf32, #tpu.memory_space<vmem>>, %arg4: memref<1x32xf32, #tpu.memory_space<vmem>>, %arg5: memref<1x32xf32, #tpu.memory_space<vmem>>, %arg6: memref<2x32x96xbf16, #tpu.memory_space<vmem>>, %arg7: memref<2x1x96xf32, #tpu.memory_space<vmem>>, %arg8: memref<2x32x32xbf16, #tpu.memory_space<vmem>>, %arg9: memref<2x1x32xf32, #tpu.memory_space<vmem>>, %arg10: memref<2x1x32xf32, #tpu.memory_space<vmem>>, %arg11: memref<2x1x32xf32, #tpu.memory_space<vmem>>, %arg12: memref<2x32x64xbf16, #tpu.memory_space<vmem>>, %arg13: memref<2x1x64xf32, #tpu.memory_space<vmem>>, %arg14: memref<2x64x32xbf16, #tpu.memory_space<vmem>>, %arg15: memref<2x1x32xf32, #tpu.memory_space<vmem>>, %arg16: memref<2x1x32xf32, #tpu.memory_space<vmem>>, %arg17: memref<2x1x32xf32, #tpu.memory_space<vmem>>, %arg18: memref<32x32xbf16, #tpu.memory_space<vmem>>, %arg19: memref<1x32xf32, #tpu.memory_space<vmem>>, %arg20: memref<32x128xbf16, #tpu.memory_space<vmem>>, %arg21: memref<1x128xf32, #tpu.memory_space<vmem>>, %arg22: memref<2x128xf32, #tpu.memory_space<vmem>>) attributes {dimension_semantics = [], scalar_prefetch = 0 : i64, scratch_operands = 0 : i64, tpu.core_type = #tpu.core_type<tc>} {
    %c0 = arith.constant 0 : index
    %c0_0 = arith.constant 0 : index
    %0 = vector.load %arg0[%c0, %c0_0] : memref<16x1xi32, #tpu.memory_space<vmem>>, vector<16x1xi32>
    %1 = tpu.iota {dimensions = array<i32: 1>} : vector<16x30xi32>
    %2 = vector.broadcast %0 : vector<16x1xi32> to vector<16x30xi32>
    %3 = arith.cmpi eq, %1, %2 : vector<16x30xi32>
    %cst = arith.constant 1.000000e+00 : f32
    %cst_1 = arith.constant 0.000000e+00 : f32
    %4 = vector.broadcast %cst : f32 to vector<16x30xf32>
    %5 = vector.broadcast %cst_1 : f32 to vector<16x30xf32>
    %6 = arith.select %3, %4, %5 : vector<16x30xi1>, vector<16x30xf32>
    %c0_2 = arith.constant 0 : index
    %c0_3 = arith.constant 0 : index
    %7 = vector.load %arg2[%c0_2, %c0_3] : memref<30x32xf32, #tpu.memory_space<vmem>>, vector<30x32xf32>
    %cst_4 = arith.constant dense<0.000000e+00> : vector<16x32xf32>
    %8 = tpu.matmul %6, %7, %cst_4 {dimension_numbers = #tpu.dot_dimension_numbers<[1], [0], [0], [1], [0, 0, 1, 1], [], []>} : vector<16x30xf32>, vector<30x32xf32>, vector<16x32xf32> -> vector<16x32xf32>
    %9 = vector.shape_cast %8 : vector<16x32xf32> to vector<2x8x32xf32>
    %c0_5 = arith.constant 0 : index
    %c0_6 = arith.constant 0 : index
    %10 = vector.load %arg3[%c0_5, %c0_6] : memref<8x32xf32, #tpu.memory_space<vmem>>, vector<8x32xf32>
    %11 = vector.shape_cast %10 : vector<8x32xf32> to vector<1x8x32xf32>
    %12 = vector.broadcast %11 : vector<1x8x32xf32> to vector<2x8x32xf32>
    %13 = arith.addf %9, %12 : vector<2x8x32xf32>
    %c0_7 = arith.constant 0 : index
    %c0_8 = arith.constant 0 : index
    %14 = vector.load %arg4[%c0_7, %c0_8] : memref<1x32xf32, #tpu.memory_space<vmem>>, vector<1x32xf32>
    %c0_9 = arith.constant 0 : index
    %c0_10 = arith.constant 0 : index
    %15 = vector.load %arg5[%c0_9, %c0_10] : memref<1x32xf32, #tpu.memory_space<vmem>>, vector<1x32xf32>
    %cst_11 = arith.constant dense<0.000000e+00> : vector<2x8xf32>
    %16 = vector.multi_reduction <add>, %13, %cst_11 [2] : vector<2x8x32xf32> to vector<2x8xf32>
    %17 = vector.shape_cast %16 : vector<2x8xf32> to vector<2x8x1xf32>
    %cst_12 = arith.constant 3.200000e+01 : f32
    %18 = vector.broadcast %cst_12 : f32 to vector<2x8x1xf32>
    %19 = arith.divf %17, %18 : vector<2x8x1xf32>
    %20 = vector.broadcast %19 : vector<2x8x1xf32> to vector<2x8x32xf32>
    %21 = arith.subf %13, %20 : vector<2x8x32xf32>
    %22 = arith.mulf %21, %21 : vector<2x8x32xf32>
    %cst_13 = arith.constant dense<0.000000e+00> : vector<2x8xf32>
    %23 = vector.multi_reduction <add>, %22, %cst_13 [2] : vector<2x8x32xf32> to vector<2x8xf32>
    %24 = vector.shape_cast %23 : vector<2x8xf32> to vector<2x8x1xf32>
    %cst_14 = arith.constant 3.200000e+01 : f32
    %25 = vector.broadcast %cst_14 : f32 to vector<2x8x1xf32>
    %26 = arith.divf %24, %25 : vector<2x8x1xf32>
    %cst_15 = arith.constant 9.99999996E-13 : f32
    %27 = vector.broadcast %cst_15 : f32 to vector<2x8x1xf32>
    %28 = arith.addf %26, %27 : vector<2x8x1xf32>
    %29 = math.rsqrt %28 : vector<2x8x1xf32>
    %30 = vector.broadcast %29 : vector<2x8x1xf32> to vector<2x8x32xf32>
    %31 = arith.mulf %21, %30 : vector<2x8x32xf32>
    %32 = vector.shape_cast %14 : vector<1x32xf32> to vector<1x1x32xf32>
    %33 = vector.broadcast %32 : vector<1x1x32xf32> to vector<2x8x32xf32>
    %34 = arith.mulf %31, %33 : vector<2x8x32xf32>
    %35 = vector.shape_cast %15 : vector<1x32xf32> to vector<1x1x32xf32>
    %36 = vector.broadcast %35 : vector<1x1x32xf32> to vector<2x8x32xf32>
    %37 = arith.addf %34, %36 : vector<2x8x32xf32>
    %38 = vector.shape_cast %37 : vector<2x8x32xf32> to vector<16x32xf32>
    %c0_16 = arith.constant 0 : index
    %c0_17 = arith.constant 0 : index
    %39 = vector.load %arg1[%c0_16, %c0_17] : memref<2x8xi32, #tpu.memory_space<vmem>>, vector<2x8xi32>
    %40 = arith.sitofp %39 : vector<2x8xi32> to vector<2x8xf32>
    %cst_18 = arith.constant 1.000000e+00 : f32
    %41 = vector.broadcast %cst_18 : f32 to vector<2x8xf32>
    %42 = arith.subf %41, %40 : vector<2x8xf32>
    %cst_19 = arith.constant -1.000000e+09 : f32
    %43 = vector.broadcast %cst_19 : f32 to vector<2x8xf32>
    %44 = arith.mulf %42, %43 : vector<2x8xf32>
    %45 = vector.shape_cast %44 : vector<2x8xf32> to vector<2x1x8xf32>
    %46 = vector.shape_cast %45 : vector<2x1x8xf32> to vector<2x1x8xf32>
    %47 = vector.broadcast %46 : vector<2x1x8xf32> to vector<2x8x8xf32>
    %c0_20 = arith.constant 0 : index
    %c0_21 = arith.constant 0 : index
    %c0_22 = arith.constant 0 : index
    %48 = vector.load %arg6[%c0_20, %c0_21, %c0_22] : memref<2x32x96xbf16, #tpu.memory_space<vmem>>, vector<1x32x96xbf16>
    %49 = vector.shape_cast %48 : vector<1x32x96xbf16> to vector<32x96xbf16>
    %50 = arith.truncf %38 : vector<16x32xf32> to vector<16x32xbf16>
    %cst_23 = arith.constant dense<0.000000e+00> : vector<16x96xf32>
    %51 = tpu.matmul %50, %49, %cst_23 {dimension_numbers = #tpu.dot_dimension_numbers<[1], [0], [0], [1], [0, 0, 1, 1], [], []>} : vector<16x32xbf16>, vector<32x96xbf16>, vector<16x96xf32> -> vector<16x96xf32>
    %c0_24 = arith.constant 0 : index
    %c0_25 = arith.constant 0 : index
    %c0_26 = arith.constant 0 : index
    %52 = vector.load %arg7[%c0_24, %c0_25, %c0_26] : memref<2x1x96xf32, #tpu.memory_space<vmem>>, vector<1x1x96xf32>
    %53 = vector.shape_cast %52 : vector<1x1x96xf32> to vector<1x96xf32>
    %54 = vector.broadcast %53 : vector<1x96xf32> to vector<16x96xf32>
    %55 = arith.addf %51, %54 : vector<16x96xf32>
    %56 = vector.extract_strided_slice %55 {offsets = [0, 0], sizes = [16, 16], strides = [1, 1]} : vector<16x96xf32> to vector<16x16xf32>
    %57 = vector.shape_cast %56 : vector<16x16xf32> to vector<2x8x16xf32>
    %58 = vector.extract_strided_slice %55 {offsets = [0, 32], sizes = [16, 16], strides = [1, 1]} : vector<16x96xf32> to vector<16x16xf32>
    %59 = vector.shape_cast %58 : vector<16x16xf32> to vector<2x8x16xf32>
    %60 = vector.extract_strided_slice %55 {offsets = [0, 64], sizes = [16, 16], strides = [1, 1]} : vector<16x96xf32> to vector<16x16xf32>
    %61 = vector.shape_cast %60 : vector<16x16xf32> to vector<2x8x16xf32>
    %62 = arith.truncf %57 : vector<2x8x16xf32> to vector<2x8x16xbf16>
    %63 = arith.truncf %59 : vector<2x8x16xf32> to vector<2x8x16xbf16>
    "tpu.trace_start"() <{level = 10 : i32, message = "bqd,bkd->bqk"}> : () -> ()
    %cst_27 = arith.constant dense<0.000000e+00> : vector<2x8x8xf32>
    %64 = tpu.matmul %62, %63, %cst_27 {dimension_numbers = #tpu.dot_dimension_numbers<[2], [2], [1], [1], [0, 0, 0, 1, 1, 1], [0], [0]>} : vector<2x8x16xbf16>, vector<2x8x16xbf16>, vector<2x8x8xf32> -> vector<2x8x8xf32>
    "tpu.trace_stop"() : () -> ()
    %cst_28 = arith.constant 2.500000e-01 : f32
    %65 = vector.broadcast %cst_28 : f32 to vector<2x8x8xf32>
    %66 = arith.mulf %64, %65 : vector<2x8x8xf32>
    %67 = arith.addf %66, %47 : vector<2x8x8xf32>
    %cst_29 = arith.constant dense<0xFF800000> : vector<2x8xf32>
    %68 = vector.multi_reduction <maximumf>, %67, %cst_29 [2] : vector<2x8x8xf32> to vector<2x8xf32>
    %69 = vector.shape_cast %68 : vector<2x8xf32> to vector<2x8x1xf32>
    %70 = vector.broadcast %69 : vector<2x8x1xf32> to vector<2x8x8xf32>
    %71 = arith.subf %67, %70 : vector<2x8x8xf32>
    %72 = math.exp %71 : vector<2x8x8xf32>
    %cst_30 = arith.constant dense<0.000000e+00> : vector<2x8xf32>
    %73 = vector.multi_reduction <add>, %72, %cst_30 [2] : vector<2x8x8xf32> to vector<2x8xf32>
    %74 = vector.shape_cast %73 : vector<2x8xf32> to vector<2x8x1xf32>
    %75 = tpu.reciprocal %74 {approx = true} : vector<2x8x1xf32> -> vector<2x8x1xf32>
    %76 = vector.broadcast %75 : vector<2x8x1xf32> to vector<2x8x8xf32>
    %77 = arith.mulf %72, %76 : vector<2x8x8xf32>
    %78 = arith.truncf %77 : vector<2x8x8xf32> to vector<2x8x8xbf16>
    %79 = arith.truncf %61 : vector<2x8x16xf32> to vector<2x8x16xbf16>
    "tpu.trace_start"() <{level = 10 : i32, message = "bqk,bkd->bqd"}> : () -> ()
    %cst_31 = arith.constant dense<0.000000e+00> : vector<2x8x16xf32>
    %80 = tpu.matmul %78, %79, %cst_31 {dimension_numbers = #tpu.dot_dimension_numbers<[2], [1], [1], [2], [0, 0, 0, 1, 1, 2], [0], [0]>} : vector<2x8x8xbf16>, vector<2x8x16xbf16>, vector<2x8x16xf32> -> vector<2x8x16xf32>
    "tpu.trace_stop"() : () -> ()
    %81 = vector.shape_cast %80 : vector<2x8x16xf32> to vector<16x16xf32>
    %82 = vector.extract_strided_slice %55 {offsets = [0, 16], sizes = [16, 16], strides = [1, 1]} : vector<16x96xf32> to vector<16x16xf32>
    %83 = vector.shape_cast %82 : vector<16x16xf32> to vector<2x8x16xf32>
    %84 = vector.extract_strided_slice %55 {offsets = [0, 48], sizes = [16, 16], strides = [1, 1]} : vector<16x96xf32> to vector<16x16xf32>
    %85 = vector.shape_cast %84 : vector<16x16xf32> to vector<2x8x16xf32>
    %86 = vector.extract_strided_slice %55 {offsets = [0, 80], sizes = [16, 16], strides = [1, 1]} : vector<16x96xf32> to vector<16x16xf32>
    %87 = vector.shape_cast %86 : vector<16x16xf32> to vector<2x8x16xf32>
    %88 = arith.truncf %83 : vector<2x8x16xf32> to vector<2x8x16xbf16>
    %89 = arith.truncf %85 : vector<2x8x16xf32> to vector<2x8x16xbf16>
    "tpu.trace_start"() <{level = 10 : i32, message = "bqd,bkd->bqk"}> : () -> ()
    %cst_32 = arith.constant dense<0.000000e+00> : vector<2x8x8xf32>
    %90 = tpu.matmul %88, %89, %cst_32 {dimension_numbers = #tpu.dot_dimension_numbers<[2], [2], [1], [1], [0, 0, 0, 1, 1, 1], [0], [0]>} : vector<2x8x16xbf16>, vector<2x8x16xbf16>, vector<2x8x8xf32> -> vector<2x8x8xf32>
    "tpu.trace_stop"() : () -> ()
    %cst_33 = arith.constant 2.500000e-01 : f32
    %91 = vector.broadcast %cst_33 : f32 to vector<2x8x8xf32>
    %92 = arith.mulf %90, %91 : vector<2x8x8xf32>
    %93 = arith.addf %92, %47 : vector<2x8x8xf32>
    %cst_34 = arith.constant dense<0xFF800000> : vector<2x8xf32>
    %94 = vector.multi_reduction <maximumf>, %93, %cst_34 [2] : vector<2x8x8xf32> to vector<2x8xf32>
    %95 = vector.shape_cast %94 : vector<2x8xf32> to vector<2x8x1xf32>
    %96 = vector.broadcast %95 : vector<2x8x1xf32> to vector<2x8x8xf32>
    %97 = arith.subf %93, %96 : vector<2x8x8xf32>
    %98 = math.exp %97 : vector<2x8x8xf32>
    %cst_35 = arith.constant dense<0.000000e+00> : vector<2x8xf32>
    %99 = vector.multi_reduction <add>, %98, %cst_35 [2] : vector<2x8x8xf32> to vector<2x8xf32>
    %100 = vector.shape_cast %99 : vector<2x8xf32> to vector<2x8x1xf32>
    %101 = tpu.reciprocal %100 {approx = true} : vector<2x8x1xf32> -> vector<2x8x1xf32>
    %102 = vector.broadcast %101 : vector<2x8x1xf32> to vector<2x8x8xf32>
    %103 = arith.mulf %98, %102 : vector<2x8x8xf32>
    %104 = arith.truncf %103 : vector<2x8x8xf32> to vector<2x8x8xbf16>
    %105 = arith.truncf %87 : vector<2x8x16xf32> to vector<2x8x16xbf16>
    "tpu.trace_start"() <{level = 10 : i32, message = "bqk,bkd->bqd"}> : () -> ()
    %cst_36 = arith.constant dense<0.000000e+00> : vector<2x8x16xf32>
    %106 = tpu.matmul %104, %105, %cst_36 {dimension_numbers = #tpu.dot_dimension_numbers<[2], [1], [1], [2], [0, 0, 0, 1, 1, 2], [0], [0]>} : vector<2x8x8xbf16>, vector<2x8x16xbf16>, vector<2x8x16xf32> -> vector<2x8x16xf32>
    "tpu.trace_stop"() : () -> ()
    %107 = vector.shape_cast %106 : vector<2x8x16xf32> to vector<16x16xf32>
    %108 = tpu.concatenate %81, %107 in 1 : vector<16x16xf32>, vector<16x16xf32> -> vector<16x32xf32>
    %c0_37 = arith.constant 0 : index
    %c0_38 = arith.constant 0 : index
    %c0_39 = arith.constant 0 : index
    %109 = vector.load %arg8[%c0_37, %c0_38, %c0_39] : memref<2x32x32xbf16, #tpu.memory_space<vmem>>, vector<1x32x32xbf16>
    %110 = vector.shape_cast %109 : vector<1x32x32xbf16> to vector<32x32xbf16>
    %111 = arith.truncf %108 : vector<16x32xf32> to vector<16x32xbf16>
    %cst_40 = arith.constant dense<0.000000e+00> : vector<16x32xf32>
    %112 = tpu.matmul %111, %110, %cst_40 {dimension_numbers = #tpu.dot_dimension_numbers<[1], [0], [0], [1], [0, 0, 1, 1], [], []>} : vector<16x32xbf16>, vector<32x32xbf16>, vector<16x32xf32> -> vector<16x32xf32>
    %c0_41 = arith.constant 0 : index
    %c0_42 = arith.constant 0 : index
    %c0_43 = arith.constant 0 : index
    %113 = vector.load %arg9[%c0_41, %c0_42, %c0_43] : memref<2x1x32xf32, #tpu.memory_space<vmem>>, vector<1x1x32xf32>
    %114 = vector.shape_cast %113 : vector<1x1x32xf32> to vector<1x32xf32>
    %115 = vector.broadcast %114 : vector<1x32xf32> to vector<16x32xf32>
    %116 = arith.addf %112, %115 : vector<16x32xf32>
    %117 = arith.addf %116, %38 : vector<16x32xf32>
    %c0_44 = arith.constant 0 : index
    %c0_45 = arith.constant 0 : index
    %c0_46 = arith.constant 0 : index
    %118 = vector.load %arg10[%c0_44, %c0_45, %c0_46] : memref<2x1x32xf32, #tpu.memory_space<vmem>>, vector<1x1x32xf32>
    %119 = vector.shape_cast %118 : vector<1x1x32xf32> to vector<1x32xf32>
    %c0_47 = arith.constant 0 : index
    %c0_48 = arith.constant 0 : index
    %c0_49 = arith.constant 0 : index
    %120 = vector.load %arg11[%c0_47, %c0_48, %c0_49] : memref<2x1x32xf32, #tpu.memory_space<vmem>>, vector<1x1x32xf32>
    %121 = vector.shape_cast %120 : vector<1x1x32xf32> to vector<1x32xf32>
    %cst_50 = arith.constant dense<0.000000e+00> : vector<16xf32>
    %122 = vector.multi_reduction <add>, %117, %cst_50 [1] : vector<16x32xf32> to vector<16xf32>
    %123 = vector.shape_cast %122 : vector<16xf32> to vector<16x1xf32>
    %cst_51 = arith.constant 3.200000e+01 : f32
    %124 = vector.broadcast %cst_51 : f32 to vector<16x1xf32>
    %125 = arith.divf %123, %124 : vector<16x1xf32>
    %126 = vector.broadcast %125 : vector<16x1xf32> to vector<16x32xf32>
    %127 = arith.subf %117, %126 : vector<16x32xf32>
    %128 = arith.mulf %127, %127 : vector<16x32xf32>
    %cst_52 = arith.constant dense<0.000000e+00> : vector<16xf32>
    %129 = vector.multi_reduction <add>, %128, %cst_52 [1] : vector<16x32xf32> to vector<16xf32>
    %130 = vector.shape_cast %129 : vector<16xf32> to vector<16x1xf32>
    %cst_53 = arith.constant 3.200000e+01 : f32
    %131 = vector.broadcast %cst_53 : f32 to vector<16x1xf32>
    %132 = arith.divf %130, %131 : vector<16x1xf32>
    %cst_54 = arith.constant 9.99999996E-13 : f32
    %133 = vector.broadcast %cst_54 : f32 to vector<16x1xf32>
    %134 = arith.addf %132, %133 : vector<16x1xf32>
    %135 = math.rsqrt %134 : vector<16x1xf32>
    %136 = vector.broadcast %135 : vector<16x1xf32> to vector<16x32xf32>
    %137 = arith.mulf %127, %136 : vector<16x32xf32>
    %138 = vector.broadcast %119 : vector<1x32xf32> to vector<16x32xf32>
    %139 = arith.mulf %137, %138 : vector<16x32xf32>
    %140 = vector.broadcast %121 : vector<1x32xf32> to vector<16x32xf32>
    %141 = arith.addf %139, %140 : vector<16x32xf32>
    %c0_55 = arith.constant 0 : index
    %c0_56 = arith.constant 0 : index
    %c0_57 = arith.constant 0 : index
    %142 = vector.load %arg12[%c0_55, %c0_56, %c0_57] : memref<2x32x64xbf16, #tpu.memory_space<vmem>>, vector<1x32x64xbf16>
    %143 = vector.shape_cast %142 : vector<1x32x64xbf16> to vector<32x64xbf16>
    %144 = arith.truncf %141 : vector<16x32xf32> to vector<16x32xbf16>
    %cst_58 = arith.constant dense<0.000000e+00> : vector<16x64xf32>
    %145 = tpu.matmul %144, %143, %cst_58 {dimension_numbers = #tpu.dot_dimension_numbers<[1], [0], [0], [1], [0, 0, 1, 1], [], []>} : vector<16x32xbf16>, vector<32x64xbf16>, vector<16x64xf32> -> vector<16x64xf32>
    %c0_59 = arith.constant 0 : index
    %c0_60 = arith.constant 0 : index
    %c0_61 = arith.constant 0 : index
    %146 = vector.load %arg13[%c0_59, %c0_60, %c0_61] : memref<2x1x64xf32, #tpu.memory_space<vmem>>, vector<1x1x64xf32>
    %147 = vector.shape_cast %146 : vector<1x1x64xf32> to vector<1x64xf32>
    %148 = vector.broadcast %147 : vector<1x64xf32> to vector<16x64xf32>
    %149 = arith.addf %145, %148 : vector<16x64xf32>
    %150 = arith.mulf %149, %149 : vector<16x64xf32>
    %151 = arith.mulf %149, %150 : vector<16x64xf32>
    %cst_62 = arith.constant 4.471500e-02 : f32
    %152 = vector.broadcast %cst_62 : f32 to vector<16x64xf32>
    %153 = arith.mulf %152, %151 : vector<16x64xf32>
    %154 = arith.addf %149, %153 : vector<16x64xf32>
    %cst_63 = arith.constant 0.797884583 : f32
    %155 = vector.broadcast %cst_63 : f32 to vector<16x64xf32>
    %156 = arith.mulf %155, %154 : vector<16x64xf32>
    %157 = math.tanh %156 : vector<16x64xf32>
    %cst_64 = arith.constant 1.000000e+00 : f32
    %158 = vector.broadcast %cst_64 : f32 to vector<16x64xf32>
    %159 = arith.addf %158, %157 : vector<16x64xf32>
    %cst_65 = arith.constant 5.000000e-01 : f32
    %160 = vector.broadcast %cst_65 : f32 to vector<16x64xf32>
    %161 = arith.mulf %160, %159 : vector<16x64xf32>
    %162 = arith.mulf %149, %161 : vector<16x64xf32>
    %c0_66 = arith.constant 0 : index
    %c0_67 = arith.constant 0 : index
    %c0_68 = arith.constant 0 : index
    %163 = vector.load %arg14[%c0_66, %c0_67, %c0_68] : memref<2x64x32xbf16, #tpu.memory_space<vmem>>, vector<1x64x32xbf16>
    %164 = vector.shape_cast %163 : vector<1x64x32xbf16> to vector<64x32xbf16>
    %165 = arith.truncf %162 : vector<16x64xf32> to vector<16x64xbf16>
    %cst_69 = arith.constant dense<0.000000e+00> : vector<16x32xf32>
    %166 = tpu.matmul %165, %164, %cst_69 {dimension_numbers = #tpu.dot_dimension_numbers<[1], [0], [0], [1], [0, 0, 1, 1], [], []>} : vector<16x64xbf16>, vector<64x32xbf16>, vector<16x32xf32> -> vector<16x32xf32>
    %c0_70 = arith.constant 0 : index
    %c0_71 = arith.constant 0 : index
    %c0_72 = arith.constant 0 : index
    %167 = vector.load %arg15[%c0_70, %c0_71, %c0_72] : memref<2x1x32xf32, #tpu.memory_space<vmem>>, vector<1x1x32xf32>
    %168 = vector.shape_cast %167 : vector<1x1x32xf32> to vector<1x32xf32>
    %169 = vector.broadcast %168 : vector<1x32xf32> to vector<16x32xf32>
    %170 = arith.addf %166, %169 : vector<16x32xf32>
    %171 = arith.addf %170, %141 : vector<16x32xf32>
    %c0_73 = arith.constant 0 : index
    %c0_74 = arith.constant 0 : index
    %c0_75 = arith.constant 0 : index
    %172 = vector.load %arg16[%c0_73, %c0_74, %c0_75] : memref<2x1x32xf32, #tpu.memory_space<vmem>>, vector<1x1x32xf32>
    %173 = vector.shape_cast %172 : vector<1x1x32xf32> to vector<1x32xf32>
    %c0_76 = arith.constant 0 : index
    %c0_77 = arith.constant 0 : index
    %c0_78 = arith.constant 0 : index
    %174 = vector.load %arg17[%c0_76, %c0_77, %c0_78] : memref<2x1x32xf32, #tpu.memory_space<vmem>>, vector<1x1x32xf32>
    %175 = vector.shape_cast %174 : vector<1x1x32xf32> to vector<1x32xf32>
    %cst_79 = arith.constant dense<0.000000e+00> : vector<16xf32>
    %176 = vector.multi_reduction <add>, %171, %cst_79 [1] : vector<16x32xf32> to vector<16xf32>
    %177 = vector.shape_cast %176 : vector<16xf32> to vector<16x1xf32>
    %cst_80 = arith.constant 3.200000e+01 : f32
    %178 = vector.broadcast %cst_80 : f32 to vector<16x1xf32>
    %179 = arith.divf %177, %178 : vector<16x1xf32>
    %180 = vector.broadcast %179 : vector<16x1xf32> to vector<16x32xf32>
    %181 = arith.subf %171, %180 : vector<16x32xf32>
    %182 = arith.mulf %181, %181 : vector<16x32xf32>
    %cst_81 = arith.constant dense<0.000000e+00> : vector<16xf32>
    %183 = vector.multi_reduction <add>, %182, %cst_81 [1] : vector<16x32xf32> to vector<16xf32>
    %184 = vector.shape_cast %183 : vector<16xf32> to vector<16x1xf32>
    %cst_82 = arith.constant 3.200000e+01 : f32
    %185 = vector.broadcast %cst_82 : f32 to vector<16x1xf32>
    %186 = arith.divf %184, %185 : vector<16x1xf32>
    %cst_83 = arith.constant 9.99999996E-13 : f32
    %187 = vector.broadcast %cst_83 : f32 to vector<16x1xf32>
    %188 = arith.addf %186, %187 : vector<16x1xf32>
    %189 = math.rsqrt %188 : vector<16x1xf32>
    %190 = vector.broadcast %189 : vector<16x1xf32> to vector<16x32xf32>
    %191 = arith.mulf %181, %190 : vector<16x32xf32>
    %192 = vector.broadcast %173 : vector<1x32xf32> to vector<16x32xf32>
    %193 = arith.mulf %191, %192 : vector<16x32xf32>
    %194 = vector.broadcast %175 : vector<1x32xf32> to vector<16x32xf32>
    %195 = arith.addf %193, %194 : vector<16x32xf32>
    %c1 = arith.constant 1 : index
    %c0_84 = arith.constant 0 : index
    %c0_85 = arith.constant 0 : index
    %196 = vector.load %arg6[%c1, %c0_84, %c0_85] : memref<2x32x96xbf16, #tpu.memory_space<vmem>>, vector<1x32x96xbf16>
    %197 = vector.shape_cast %196 : vector<1x32x96xbf16> to vector<32x96xbf16>
    %198 = arith.truncf %195 : vector<16x32xf32> to vector<16x32xbf16>
    %cst_86 = arith.constant dense<0.000000e+00> : vector<16x96xf32>
    %199 = tpu.matmul %198, %197, %cst_86 {dimension_numbers = #tpu.dot_dimension_numbers<[1], [0], [0], [1], [0, 0, 1, 1], [], []>} : vector<16x32xbf16>, vector<32x96xbf16>, vector<16x96xf32> -> vector<16x96xf32>
    %c1_87 = arith.constant 1 : index
    %c0_88 = arith.constant 0 : index
    %c0_89 = arith.constant 0 : index
    %200 = vector.load %arg7[%c1_87, %c0_88, %c0_89] : memref<2x1x96xf32, #tpu.memory_space<vmem>>, vector<1x1x96xf32>
    %201 = vector.shape_cast %200 : vector<1x1x96xf32> to vector<1x96xf32>
    %202 = vector.broadcast %201 : vector<1x96xf32> to vector<16x96xf32>
    %203 = arith.addf %199, %202 : vector<16x96xf32>
    %204 = vector.extract_strided_slice %203 {offsets = [0, 0], sizes = [16, 16], strides = [1, 1]} : vector<16x96xf32> to vector<16x16xf32>
    %205 = vector.shape_cast %204 : vector<16x16xf32> to vector<2x8x16xf32>
    %206 = vector.extract_strided_slice %203 {offsets = [0, 32], sizes = [16, 16], strides = [1, 1]} : vector<16x96xf32> to vector<16x16xf32>
    %207 = vector.shape_cast %206 : vector<16x16xf32> to vector<2x8x16xf32>
    %208 = vector.extract_strided_slice %203 {offsets = [0, 64], sizes = [16, 16], strides = [1, 1]} : vector<16x96xf32> to vector<16x16xf32>
    %209 = vector.shape_cast %208 : vector<16x16xf32> to vector<2x8x16xf32>
    %210 = arith.truncf %205 : vector<2x8x16xf32> to vector<2x8x16xbf16>
    %211 = arith.truncf %207 : vector<2x8x16xf32> to vector<2x8x16xbf16>
    "tpu.trace_start"() <{level = 10 : i32, message = "bqd,bkd->bqk"}> : () -> ()
    %cst_90 = arith.constant dense<0.000000e+00> : vector<2x8x8xf32>
    %212 = tpu.matmul %210, %211, %cst_90 {dimension_numbers = #tpu.dot_dimension_numbers<[2], [2], [1], [1], [0, 0, 0, 1, 1, 1], [0], [0]>} : vector<2x8x16xbf16>, vector<2x8x16xbf16>, vector<2x8x8xf32> -> vector<2x8x8xf32>
    "tpu.trace_stop"() : () -> ()
    %cst_91 = arith.constant 2.500000e-01 : f32
    %213 = vector.broadcast %cst_91 : f32 to vector<2x8x8xf32>
    %214 = arith.mulf %212, %213 : vector<2x8x8xf32>
    %215 = arith.addf %214, %47 : vector<2x8x8xf32>
    %cst_92 = arith.constant dense<0xFF800000> : vector<2x8xf32>
    %216 = vector.multi_reduction <maximumf>, %215, %cst_92 [2] : vector<2x8x8xf32> to vector<2x8xf32>
    %217 = vector.shape_cast %216 : vector<2x8xf32> to vector<2x8x1xf32>
    %218 = vector.broadcast %217 : vector<2x8x1xf32> to vector<2x8x8xf32>
    %219 = arith.subf %215, %218 : vector<2x8x8xf32>
    %220 = math.exp %219 : vector<2x8x8xf32>
    %cst_93 = arith.constant dense<0.000000e+00> : vector<2x8xf32>
    %221 = vector.multi_reduction <add>, %220, %cst_93 [2] : vector<2x8x8xf32> to vector<2x8xf32>
    %222 = vector.shape_cast %221 : vector<2x8xf32> to vector<2x8x1xf32>
    %223 = tpu.reciprocal %222 {approx = true} : vector<2x8x1xf32> -> vector<2x8x1xf32>
    %224 = vector.broadcast %223 : vector<2x8x1xf32> to vector<2x8x8xf32>
    %225 = arith.mulf %220, %224 : vector<2x8x8xf32>
    %226 = arith.truncf %225 : vector<2x8x8xf32> to vector<2x8x8xbf16>
    %227 = arith.truncf %209 : vector<2x8x16xf32> to vector<2x8x16xbf16>
    "tpu.trace_start"() <{level = 10 : i32, message = "bqk,bkd->bqd"}> : () -> ()
    %cst_94 = arith.constant dense<0.000000e+00> : vector<2x8x16xf32>
    %228 = tpu.matmul %226, %227, %cst_94 {dimension_numbers = #tpu.dot_dimension_numbers<[2], [1], [1], [2], [0, 0, 0, 1, 1, 2], [0], [0]>} : vector<2x8x8xbf16>, vector<2x8x16xbf16>, vector<2x8x16xf32> -> vector<2x8x16xf32>
    "tpu.trace_stop"() : () -> ()
    %229 = vector.shape_cast %228 : vector<2x8x16xf32> to vector<16x16xf32>
    %230 = vector.extract_strided_slice %203 {offsets = [0, 16], sizes = [16, 16], strides = [1, 1]} : vector<16x96xf32> to vector<16x16xf32>
    %231 = vector.shape_cast %230 : vector<16x16xf32> to vector<2x8x16xf32>
    %232 = vector.extract_strided_slice %203 {offsets = [0, 48], sizes = [16, 16], strides = [1, 1]} : vector<16x96xf32> to vector<16x16xf32>
    %233 = vector.shape_cast %232 : vector<16x16xf32> to vector<2x8x16xf32>
    %234 = vector.extract_strided_slice %203 {offsets = [0, 80], sizes = [16, 16], strides = [1, 1]} : vector<16x96xf32> to vector<16x16xf32>
    %235 = vector.shape_cast %234 : vector<16x16xf32> to vector<2x8x16xf32>
    %236 = arith.truncf %231 : vector<2x8x16xf32> to vector<2x8x16xbf16>
    %237 = arith.truncf %233 : vector<2x8x16xf32> to vector<2x8x16xbf16>
    "tpu.trace_start"() <{level = 10 : i32, message = "bqd,bkd->bqk"}> : () -> ()
    %cst_95 = arith.constant dense<0.000000e+00> : vector<2x8x8xf32>
    %238 = tpu.matmul %236, %237, %cst_95 {dimension_numbers = #tpu.dot_dimension_numbers<[2], [2], [1], [1], [0, 0, 0, 1, 1, 1], [0], [0]>} : vector<2x8x16xbf16>, vector<2x8x16xbf16>, vector<2x8x8xf32> -> vector<2x8x8xf32>
    "tpu.trace_stop"() : () -> ()
    %cst_96 = arith.constant 2.500000e-01 : f32
    %239 = vector.broadcast %cst_96 : f32 to vector<2x8x8xf32>
    %240 = arith.mulf %238, %239 : vector<2x8x8xf32>
    %241 = arith.addf %240, %47 : vector<2x8x8xf32>
    %cst_97 = arith.constant dense<0xFF800000> : vector<2x8xf32>
    %242 = vector.multi_reduction <maximumf>, %241, %cst_97 [2] : vector<2x8x8xf32> to vector<2x8xf32>
    %243 = vector.shape_cast %242 : vector<2x8xf32> to vector<2x8x1xf32>
    %244 = vector.broadcast %243 : vector<2x8x1xf32> to vector<2x8x8xf32>
    %245 = arith.subf %241, %244 : vector<2x8x8xf32>
    %246 = math.exp %245 : vector<2x8x8xf32>
    %cst_98 = arith.constant dense<0.000000e+00> : vector<2x8xf32>
    %247 = vector.multi_reduction <add>, %246, %cst_98 [2] : vector<2x8x8xf32> to vector<2x8xf32>
    %248 = vector.shape_cast %247 : vector<2x8xf32> to vector<2x8x1xf32>
    %249 = tpu.reciprocal %248 {approx = true} : vector<2x8x1xf32> -> vector<2x8x1xf32>
    %250 = vector.broadcast %249 : vector<2x8x1xf32> to vector<2x8x8xf32>
    %251 = arith.mulf %246, %250 : vector<2x8x8xf32>
    %252 = arith.truncf %251 : vector<2x8x8xf32> to vector<2x8x8xbf16>
    %253 = arith.truncf %235 : vector<2x8x16xf32> to vector<2x8x16xbf16>
    "tpu.trace_start"() <{level = 10 : i32, message = "bqk,bkd->bqd"}> : () -> ()
    %cst_99 = arith.constant dense<0.000000e+00> : vector<2x8x16xf32>
    %254 = tpu.matmul %252, %253, %cst_99 {dimension_numbers = #tpu.dot_dimension_numbers<[2], [1], [1], [2], [0, 0, 0, 1, 1, 2], [0], [0]>} : vector<2x8x8xbf16>, vector<2x8x16xbf16>, vector<2x8x16xf32> -> vector<2x8x16xf32>
    "tpu.trace_stop"() : () -> ()
    %255 = vector.shape_cast %254 : vector<2x8x16xf32> to vector<16x16xf32>
    %256 = tpu.concatenate %229, %255 in 1 : vector<16x16xf32>, vector<16x16xf32> -> vector<16x32xf32>
    %c1_100 = arith.constant 1 : index
    %c0_101 = arith.constant 0 : index
    %c0_102 = arith.constant 0 : index
    %257 = vector.load %arg8[%c1_100, %c0_101, %c0_102] : memref<2x32x32xbf16, #tpu.memory_space<vmem>>, vector<1x32x32xbf16>
    %258 = vector.shape_cast %257 : vector<1x32x32xbf16> to vector<32x32xbf16>
    %259 = arith.truncf %256 : vector<16x32xf32> to vector<16x32xbf16>
    %cst_103 = arith.constant dense<0.000000e+00> : vector<16x32xf32>
    %260 = tpu.matmul %259, %258, %cst_103 {dimension_numbers = #tpu.dot_dimension_numbers<[1], [0], [0], [1], [0, 0, 1, 1], [], []>} : vector<16x32xbf16>, vector<32x32xbf16>, vector<16x32xf32> -> vector<16x32xf32>
    %c1_104 = arith.constant 1 : index
    %c0_105 = arith.constant 0 : index
    %c0_106 = arith.constant 0 : index
    %261 = vector.load %arg9[%c1_104, %c0_105, %c0_106] : memref<2x1x32xf32, #tpu.memory_space<vmem>>, vector<1x1x32xf32>
    %262 = vector.shape_cast %261 : vector<1x1x32xf32> to vector<1x32xf32>
    %263 = vector.broadcast %262 : vector<1x32xf32> to vector<16x32xf32>
    %264 = arith.addf %260, %263 : vector<16x32xf32>
    %265 = arith.addf %264, %195 : vector<16x32xf32>
    %c1_107 = arith.constant 1 : index
    %c0_108 = arith.constant 0 : index
    %c0_109 = arith.constant 0 : index
    %266 = vector.load %arg10[%c1_107, %c0_108, %c0_109] : memref<2x1x32xf32, #tpu.memory_space<vmem>>, vector<1x1x32xf32>
    %267 = vector.shape_cast %266 : vector<1x1x32xf32> to vector<1x32xf32>
    %c1_110 = arith.constant 1 : index
    %c0_111 = arith.constant 0 : index
    %c0_112 = arith.constant 0 : index
    %268 = vector.load %arg11[%c1_110, %c0_111, %c0_112] : memref<2x1x32xf32, #tpu.memory_space<vmem>>, vector<1x1x32xf32>
    %269 = vector.shape_cast %268 : vector<1x1x32xf32> to vector<1x32xf32>
    %cst_113 = arith.constant dense<0.000000e+00> : vector<16xf32>
    %270 = vector.multi_reduction <add>, %265, %cst_113 [1] : vector<16x32xf32> to vector<16xf32>
    %271 = vector.shape_cast %270 : vector<16xf32> to vector<16x1xf32>
    %cst_114 = arith.constant 3.200000e+01 : f32
    %272 = vector.broadcast %cst_114 : f32 to vector<16x1xf32>
    %273 = arith.divf %271, %272 : vector<16x1xf32>
    %274 = vector.broadcast %273 : vector<16x1xf32> to vector<16x32xf32>
    %275 = arith.subf %265, %274 : vector<16x32xf32>
    %276 = arith.mulf %275, %275 : vector<16x32xf32>
    %cst_115 = arith.constant dense<0.000000e+00> : vector<16xf32>
    %277 = vector.multi_reduction <add>, %276, %cst_115 [1] : vector<16x32xf32> to vector<16xf32>
    %278 = vector.shape_cast %277 : vector<16xf32> to vector<16x1xf32>
    %cst_116 = arith.constant 3.200000e+01 : f32
    %279 = vector.broadcast %cst_116 : f32 to vector<16x1xf32>
    %280 = arith.divf %278, %279 : vector<16x1xf32>
    %cst_117 = arith.constant 9.99999996E-13 : f32
    %281 = vector.broadcast %cst_117 : f32 to vector<16x1xf32>
    %282 = arith.addf %280, %281 : vector<16x1xf32>
    %283 = math.rsqrt %282 : vector<16x1xf32>
    %284 = vector.broadcast %283 : vector<16x1xf32> to vector<16x32xf32>
    %285 = arith.mulf %275, %284 : vector<16x32xf32>
    %286 = vector.broadcast %267 : vector<1x32xf32> to vector<16x32xf32>
    %287 = arith.mulf %285, %286 : vector<16x32xf32>
    %288 = vector.broadcast %269 : vector<1x32xf32> to vector<16x32xf32>
    %289 = arith.addf %287, %288 : vector<16x32xf32>
    %c1_118 = arith.constant 1 : index
    %c0_119 = arith.constant 0 : index
    %c0_120 = arith.constant 0 : index
    %290 = vector.load %arg12[%c1_118, %c0_119, %c0_120] : memref<2x32x64xbf16, #tpu.memory_space<vmem>>, vector<1x32x64xbf16>
    %291 = vector.shape_cast %290 : vector<1x32x64xbf16> to vector<32x64xbf16>
    %292 = arith.truncf %289 : vector<16x32xf32> to vector<16x32xbf16>
    %cst_121 = arith.constant dense<0.000000e+00> : vector<16x64xf32>
    %293 = tpu.matmul %292, %291, %cst_121 {dimension_numbers = #tpu.dot_dimension_numbers<[1], [0], [0], [1], [0, 0, 1, 1], [], []>} : vector<16x32xbf16>, vector<32x64xbf16>, vector<16x64xf32> -> vector<16x64xf32>
    %c1_122 = arith.constant 1 : index
    %c0_123 = arith.constant 0 : index
    %c0_124 = arith.constant 0 : index
    %294 = vector.load %arg13[%c1_122, %c0_123, %c0_124] : memref<2x1x64xf32, #tpu.memory_space<vmem>>, vector<1x1x64xf32>
    %295 = vector.shape_cast %294 : vector<1x1x64xf32> to vector<1x64xf32>
    %296 = vector.broadcast %295 : vector<1x64xf32> to vector<16x64xf32>
    %297 = arith.addf %293, %296 : vector<16x64xf32>
    %298 = arith.mulf %297, %297 : vector<16x64xf32>
    %299 = arith.mulf %297, %298 : vector<16x64xf32>
    %cst_125 = arith.constant 4.471500e-02 : f32
    %300 = vector.broadcast %cst_125 : f32 to vector<16x64xf32>
    %301 = arith.mulf %300, %299 : vector<16x64xf32>
    %302 = arith.addf %297, %301 : vector<16x64xf32>
    %cst_126 = arith.constant 0.797884583 : f32
    %303 = vector.broadcast %cst_126 : f32 to vector<16x64xf32>
    %304 = arith.mulf %303, %302 : vector<16x64xf32>
    %305 = math.tanh %304 : vector<16x64xf32>
    %cst_127 = arith.constant 1.000000e+00 : f32
    %306 = vector.broadcast %cst_127 : f32 to vector<16x64xf32>
    %307 = arith.addf %306, %305 : vector<16x64xf32>
    %cst_128 = arith.constant 5.000000e-01 : f32
    %308 = vector.broadcast %cst_128 : f32 to vector<16x64xf32>
    %309 = arith.mulf %308, %307 : vector<16x64xf32>
    %310 = arith.mulf %297, %309 : vector<16x64xf32>
    %c1_129 = arith.constant 1 : index
    %c0_130 = arith.constant 0 : index
    %c0_131 = arith.constant 0 : index
    %311 = vector.load %arg14[%c1_129, %c0_130, %c0_131] : memref<2x64x32xbf16, #tpu.memory_space<vmem>>, vector<1x64x32xbf16>
    %312 = vector.shape_cast %311 : vector<1x64x32xbf16> to vector<64x32xbf16>
    %313 = arith.truncf %310 : vector<16x64xf32> to vector<16x64xbf16>
    %cst_132 = arith.constant dense<0.000000e+00> : vector<16x32xf32>
    %314 = tpu.matmul %313, %312, %cst_132 {dimension_numbers = #tpu.dot_dimension_numbers<[1], [0], [0], [1], [0, 0, 1, 1], [], []>} : vector<16x64xbf16>, vector<64x32xbf16>, vector<16x32xf32> -> vector<16x32xf32>
    %c1_133 = arith.constant 1 : index
    %c0_134 = arith.constant 0 : index
    %c0_135 = arith.constant 0 : index
    %315 = vector.load %arg15[%c1_133, %c0_134, %c0_135] : memref<2x1x32xf32, #tpu.memory_space<vmem>>, vector<1x1x32xf32>
    %316 = vector.shape_cast %315 : vector<1x1x32xf32> to vector<1x32xf32>
    %317 = vector.broadcast %316 : vector<1x32xf32> to vector<16x32xf32>
    %318 = arith.addf %314, %317 : vector<16x32xf32>
    %319 = arith.addf %318, %289 : vector<16x32xf32>
    %c1_136 = arith.constant 1 : index
    %c0_137 = arith.constant 0 : index
    %c0_138 = arith.constant 0 : index
    %320 = vector.load %arg16[%c1_136, %c0_137, %c0_138] : memref<2x1x32xf32, #tpu.memory_space<vmem>>, vector<1x1x32xf32>
    %321 = vector.shape_cast %320 : vector<1x1x32xf32> to vector<1x32xf32>
    %c1_139 = arith.constant 1 : index
    %c0_140 = arith.constant 0 : index
    %c0_141 = arith.constant 0 : index
    %322 = vector.load %arg17[%c1_139, %c0_140, %c0_141] : memref<2x1x32xf32, #tpu.memory_space<vmem>>, vector<1x1x32xf32>
    %323 = vector.shape_cast %322 : vector<1x1x32xf32> to vector<1x32xf32>
    %cst_142 = arith.constant dense<0.000000e+00> : vector<16xf32>
    %324 = vector.multi_reduction <add>, %319, %cst_142 [1] : vector<16x32xf32> to vector<16xf32>
    %325 = vector.shape_cast %324 : vector<16xf32> to vector<16x1xf32>
    %cst_143 = arith.constant 3.200000e+01 : f32
    %326 = vector.broadcast %cst_143 : f32 to vector<16x1xf32>
    %327 = arith.divf %325, %326 : vector<16x1xf32>
    %328 = vector.broadcast %327 : vector<16x1xf32> to vector<16x32xf32>
    %329 = arith.subf %319, %328 : vector<16x32xf32>
    %330 = arith.mulf %329, %329 : vector<16x32xf32>
    %cst_144 = arith.constant dense<0.000000e+00> : vector<16xf32>
    %331 = vector.multi_reduction <add>, %330, %cst_144 [1] : vector<16x32xf32> to vector<16xf32>
    %332 = vector.shape_cast %331 : vector<16xf32> to vector<16x1xf32>
    %cst_145 = arith.constant 3.200000e+01 : f32
    %333 = vector.broadcast %cst_145 : f32 to vector<16x1xf32>
    %334 = arith.divf %332, %333 : vector<16x1xf32>
    %cst_146 = arith.constant 9.99999996E-13 : f32
    %335 = vector.broadcast %cst_146 : f32 to vector<16x1xf32>
    %336 = arith.addf %334, %335 : vector<16x1xf32>
    %337 = math.rsqrt %336 : vector<16x1xf32>
    %338 = vector.broadcast %337 : vector<16x1xf32> to vector<16x32xf32>
    %339 = arith.mulf %329, %338 : vector<16x32xf32>
    %340 = vector.broadcast %321 : vector<1x32xf32> to vector<16x32xf32>
    %341 = arith.mulf %339, %340 : vector<16x32xf32>
    %342 = vector.broadcast %323 : vector<1x32xf32> to vector<16x32xf32>
    %343 = arith.addf %341, %342 : vector<16x32xf32>
    %344 = vector.shape_cast %343 : vector<16x32xf32> to vector<2x8x32xf32>
    %345 = vector.extract_strided_slice %344 {offsets = [0, 0, 0], sizes = [2, 1, 32], strides = [1, 1, 1]} : vector<2x8x32xf32> to vector<2x1x32xf32>
    %346 = vector.shape_cast %345 : vector<2x1x32xf32> to vector<2x32xf32>
    %c0_147 = arith.constant 0 : index
    %c0_148 = arith.constant 0 : index
    %347 = vector.load %arg18[%c0_147, %c0_148] : memref<32x32xbf16, #tpu.memory_space<vmem>>, vector<32x32xbf16>
    %348 = arith.truncf %346 : vector<2x32xf32> to vector<2x32xbf16>
    %cst_149 = arith.constant dense<0.000000e+00> : vector<2x32xf32>
    %349 = tpu.matmul %348, %347, %cst_149 {dimension_numbers = #tpu.dot_dimension_numbers<[1], [0], [0], [1], [0, 0, 1, 1], [], []>} : vector<2x32xbf16>, vector<32x32xbf16>, vector<2x32xf32> -> vector<2x32xf32>
    %c0_150 = arith.constant 0 : index
    %c0_151 = arith.constant 0 : index
    %350 = vector.load %arg19[%c0_150, %c0_151] : memref<1x32xf32, #tpu.memory_space<vmem>>, vector<1x32xf32>
    %351 = vector.broadcast %350 : vector<1x32xf32> to vector<2x32xf32>
    %352 = arith.addf %349, %351 : vector<2x32xf32>
    %353 = math.tanh %352 : vector<2x32xf32>
    %c0_152 = arith.constant 0 : index
    %c0_153 = arith.constant 0 : index
    %354 = vector.load %arg20[%c0_152, %c0_153] : memref<32x128xbf16, #tpu.memory_space<vmem>>, vector<32x128xbf16>
    %355 = arith.truncf %353 : vector<2x32xf32> to vector<2x32xbf16>
    %cst_154 = arith.constant dense<0.000000e+00> : vector<2x128xf32>
    %356 = tpu.matmul %355, %354, %cst_154 {dimension_numbers = #tpu.dot_dimension_numbers<[1], [0], [0], [1], [0, 0, 1, 1], [], []>} : vector<2x32xbf16>, vector<32x128xbf16>, vector<2x128xf32> -> vector<2x128xf32>
    %c0_155 = arith.constant 0 : index
    %c0_156 = arith.constant 0 : index
    %357 = vector.load %arg21[%c0_155, %c0_156] : memref<1x128xf32, #tpu.memory_space<vmem>>, vector<1x128xf32>
    %358 = vector.broadcast %357 : vector<1x128xf32> to vector<2x128xf32>
    %359 = arith.addf %356, %358 : vector<2x128xf32>
    %cst_157 = arith.constant 0.000000e+00 : f32
    %360 = vector.broadcast %cst_157 : f32 to vector<2x128xf32>
    %361 = arith.subf %360, %359 : vector<2x128xf32>
    %362 = math.exp %361 : vector<2x128xf32>
    %cst_158 = arith.constant 1.000000e+00 : f32
    %363 = vector.broadcast %cst_158 : f32 to vector<2x128xf32>
    %364 = arith.addf %363, %362 : vector<2x128xf32>
    %cst_159 = arith.constant 1.000000e+00 : f32
    %365 = vector.broadcast %cst_159 : f32 to vector<2x128xf32>
    %366 = arith.divf %365, %364 : vector<2x128xf32>
    %c0_160 = arith.constant 0 : index
    %c0_161 = arith.constant 0 : index
    %367 = vector.load %arg22[%c0_160, %c0_161] : memref<2x128xf32, #tpu.memory_space<vmem>>, vector<2x128xf32>
    tpu.vector_store %arg22[%c0_160, %c0_161], %366 {strides = array<i32>} : memref<2x128xf32, #tpu.memory_space<vmem>>, vector<2x128xf32>,
    return
  }
}

</mosaic_0001>

<bundles_post_ra>
// kernel: peptide_bert_forward.1
= control target key start
LH: loop header
LB: loop body
LE: loop exit
PB: predicated region body
PF: predicated region fallthrough
CT: control target
= control target key end

     0   :  { %s3758_s0 = inlined_call_operand.vmem [shape: s32[16,1], index: 0, kind: input, shape index: {}]   ;;  %s3759_s1 = inlined_call_operand.vmem [shape: s32[2,8], index: 1, kind: input, shape index: {}]   ;;  %s3760_s2 = inlined_call_operand.vmem [shape: f32[30,32], index: 2, kind: input, shape index: {}]   ;;  %s3761_s3 = inlined_call_operand.vmem [shape: f32[8,32], index: 3, kind: input, shape index: {}]   ;;  %s3762_s4 = inlined_call_operand.hbm [shape: f32[1,32], index: 4, kind: input, shape index: {}]   ;;  %s3763_s5 = inlined_call_operand.hbm [shape: f32[1,32], index: 5, kind: input, shape index: {}]   ;;  %s3764_s6 = inlined_call_operand.vmem [shape: bf16[2,32,96], index: 6, kind: input, shape index: {}]   ;;  %s3765_s7 = inlined_call_operand.hbm [shape: f32[2,1,96], index: 7, kind: input, shape index: {}]   ;;  %s3766_s8 = inlined_call_operand.vmem [shape: bf16[2,32,32], index: 8, kind: input, shape index: {}]   ;;  %s3767_s9 = inlined_call_operand.hbm [shape: f32[2,1,32], index: 9, kind: input, shape index: {}]   ;;  %s3768_s10 = inlined_call_operand.hbm [shape: f32[2,1,32], index: 10, kind: input, shape index: {}]   ;;  %s3769_s11 = inlined_call_operand.hbm [shape: f32[2,1,32], index: 11, kind: input, shape index: {}]   ;;  %s3770_s12 = inlined_call_operand.vmem [shape: bf16[2,32,64], index: 12, kind: input, shape index: {}]   ;;  %s3771_s13 = inlined_call_operand.hbm [shape: f32[2,1,64], index: 13, kind: input, shape index: {}]   ;;  %s3772_s14 = inlined_call_operand.vmem [shape: bf16[2,64,32], index: 14, kind: input, shape index: {}]   ;;  %s3773_s15 = inlined_call_operand.hbm [shape: f32[2,1,32], index: 15, kind: input, shape index: {}]   ;;  %s3774_s16 = inlined_call_operand.hbm [shape: f32[2,1,32], index: 16, kind: input, shape index: {}]   ;;  %s3775_s17 = inlined_call_operand.hbm [shape: f32[2,1,32], index: 17, kind: input, shape index: {}]   ;;  %s3776_s18 = inlined_call_operand.vmem [shape: bf16[32,32], index: 18, kind: input, shape index: {}]   ;;  %s3777_s19 = inlined_call_operand.hbm [shape: f32[1,32], index: 19, kind: input, shape index: {}]   ;;  %s3778_s20 = inlined_call_operand.vmem [shape: bf16[32,128], index: 20, kind: input, shape index: {}]   ;;  %s3779_s21 = inlined_call_operand.hbm [shape: f32[1,128], index: 21, kind: input, shape index: {}]   ;;  %s3780_s22 = inlined_call_operand.vmem [shape: f32[2,128], index: 22, kind: output, shape index: {}]  }
   0x1   :  { %3786 = sst [smem:[#allocation28_spill]] %s3758_s0 }
   0x2   :  { %3787 = sst [smem:[#allocation29_spill]] %s3759_s1 }
   0x3   :  { %3788 = sst [smem:[#allocation30_spill]] %s3760_s2 }
   0x4   :  { %3789 = sst [smem:[#allocation31_spill]] %s3761_s3 }
   0x5   :  { %3790 = sst [smem:[#allocation32_spill]] %s3762_s4 }
   0x6   :  { %3791 = sst [smem:[#allocation33_spill]] %s3763_s5 }
   0x7   :  { %3792 = sst [smem:[#allocation34_spill]] %s3764_s6 }
   0x8   :  { %27 = vsyncpa [#allocation3], 0 }
   0x9   :  { %28 = vsyncpa [#allocation5], 0 }
   0xa   :  { %29 = vsyncpa [#allocation8], 0 }
   0xb   :  { %30 = vsyncpa [#allocation11], 0 }
   0xc   :  { %31 = vsyncpa [#allocation14], 0 }
   0xd   :  { %32 = vsyncpa [#allocation17], 0 }
   0xe   :  { %33 = vsyncpa [#allocation20], 0  ;;  %s3080_s3 = smov [#allocation4]   ;;  %s3793_s4 = sld [smem:[#allocation33_spill]] }
   0xf   :  { %s58_s28 = sshll.u32 %s3080_s3, 4  ;;  %s59_s28 = int_to_ptr.vmem [resolvable:$true] %s58_s28 }
  0x14   :  { %s2802_s0 = scalar_lea.hbm %s3793_s4, 16 }
  0x15   :  { %p2803_p0 = scmp.ne.s32.totalorder %s3793_s4, %s2802_s0  ;;  %p2806_p1 = scmp.lt.u32.totalorder %s2802_s0, %s3793_s4 }
  0x17   :  { %p2808_p2 = pnand %p2806_p1, %p2803_p0 }
  0x19   :  { %2811 = shalt.err (!%p2808_p2)
}
  0x1a   :  { %s2812_s6 = scalar_lea.vmem %s59_s28, 16  ;;  %s2816_s25 = scalar_lea.vmem %s59_s28, 32 }
  0x1b   :  { %p2813_p3 = scmp.ne.s32.totalorder %s59_s28, %s2812_s6  ;;  %p2817_p4 = scmp.lt.s32.totalorder %s59_s28, %s59_s28 }
  0x1c   :  { %p2818_p5 = scmp.lt.s32.totalorder %s2816_s25, %s2812_s6 }
  0x1e   :  { %p2819_p6 = por %p2818_p5, %p2817_p4 }
  0x20   :  { %p2820_p7 = pnand %p2819_p6, %p2813_p3 }
  0x22   :  { %2823 = shalt.err (!%p2820_p7)
}
  0x23   :  { %61 = dma.hbm_to_vmem [thread:$0]  %s3793_s4, 16, %s59_s28, [#allocation5]  }
  0x24   :  { %s3081_s27 = smov [#allocation7]   ;;  %s3082_s29 = smov [#allocation10]  }
  0x25   :  { %s83_s3 = sshll.u32 %s3081_s27, 4  ;;  %s107_s30 = sshll.u32 %s3082_s29, 4  ;;  %s84_s3 = int_to_ptr.vmem [resolvable:$true] %s83_s3  ;;  %s108_s30 = int_to_ptr.vmem [resolvable:$true] %s107_s30 }
  0x26   :  { %s2824_s1 = scalar_lea.hbm %s3767_s9, 32 }
  0x27   :  { %p2825_p8 = scmp.ne.s32.totalorder %s3767_s9, %s2824_s1  ;;  %p2828_p9 = scmp.lt.u32.totalorder %s2824_s1, %s3767_s9 }
  0x29   :  { %p2830_p10 = pnand %p2828_p9, %p2825_p8 }
  0x2b   :  { %2833 = shalt.err (!%p2830_p10)
}
  0x2c   :  { %s2834_s28 = scalar_lea.vmem %s84_s3, 32  ;;  %p2839_p12 = scmp.lt.s32.totalorder %s84_s3, %s84_s3 }
  0x2d   :  { %p2835_p11 = scmp.ne.s32.totalorder %s84_s3, %s2834_s28  ;;  %p2840_p13 = scmp.lt.s32.totalorder %s2834_s28, %s2834_s28 }
  0x2f   :  { %p2841_p0 = por %p2840_p13, %p2839_p12 }
  0x31   :  { %p2842_p1 = pnand %p2841_p0, %p2835_p11 }
  0x33   :  { %2845 = shalt.err (!%p2842_p1)
}
  0x34   :  { %s3083_s4 = smov 16   ;;  %s3084_s26 = smov 1  }
  0x35   :  { %89 = dma.hbm_to_vmem [thread:$0]  %s3767_s9, 32, %s84_s3, [#allocation8], %s3083_s4, %s3083_s4, %s3084_s26  }
  0x36   :  { %s2846_s23 = scalar_lea.hbm %s3769_s11, 32 }
  0x37   :  { %p2847_p2 = scmp.ne.s32.totalorder %s3769_s11, %s2846_s23  ;;  %p2850_p3 = scmp.lt.u32.totalorder %s2846_s23, %s3769_s11 }
  0x39   :  { %p2852_p4 = pnand %p2850_p3, %p2847_p2 }
  0x3b   :  { %2855 = shalt.err (!%p2852_p4)
}
  0x3c   :  { %s2856_s25 = scalar_lea.vmem %s108_s30, 32  ;;  %p2861_p6 = scmp.lt.s32.totalorder %s108_s30, %s108_s30 }
  0x3d   :  { %p2857_p5 = scmp.ne.s32.totalorder %s108_s30, %s2856_s25  ;;  %p2862_p7 = scmp.lt.s32.totalorder %s2856_s25, %s2856_s25 }
  0x3f   :  { %p2863_p8 = por %p2862_p7, %p2861_p6 }
  0x41   :  { %p2864_p9 = pnand %p2863_p8, %p2857_p5 }
  0x43   :  { %2867 = shalt.err (!%p2864_p9)
}
  0x44   :  { %113 = dma.hbm_to_vmem [thread:$0]  %s3769_s11, 32, %s108_s30, [#allocation11], %s3083_s4, %s3083_s4, %s3084_s26  }
  0x45   :  { %s3085_s28 = smov [#allocation13]   ;;  %s3086_s27 = smov [#allocation16]  }
  0x46   :  { %s135_s2 = sshll.u32 %s3085_s28, 4  ;;  %s159_s29 = sshll.u32 %s3086_s27, 4  ;;  %s136_s2 = int_to_ptr.vmem [resolvable:$true] %s135_s2  ;;  %s160_s29 = int_to_ptr.vmem [resolvable:$true] %s159_s29 }
  0x47   :  { %s2868_s1 = scalar_lea.hbm %s3773_s15, 32 }
  0x48   :  { %p2869_p10 = scmp.ne.s32.totalorder %s3773_s15, %s2868_s1  ;;  %p2872_p11 = scmp.lt.u32.totalorder %s2868_s1, %s3773_s15 }
  0x4a   :  { %p2874_p12 = pnand %p2872_p11, %p2869_p10 }
  0x4c   :  { %2877 = shalt.err (!%p2874_p12)
}
  0x4d   :  { %s2878_s11 = scalar_lea.vmem %s136_s2, 32  ;;  %p2883_p0 = scmp.lt.s32.totalorder %s136_s2, %s136_s2 }
  0x4e   :  { %p2879_p13 = scmp.ne.s32.totalorder %s136_s2, %s2878_s11  ;;  %p2884_p1 = scmp.lt.s32.totalorder %s2878_s11, %s2878_s11 }
  0x50   :  { %p2885_p2 = por %p2884_p1, %p2883_p0 }
  0x52   :  { %p2886_p3 = pnand %p2885_p2, %p2879_p13 }
  0x54   :  { %2889 = shalt.err (!%p2886_p3)
}
  0x55   :  { %141 = dma.hbm_to_vmem [thread:$0]  %s3773_s15, 32, %s136_s2, [#allocation14], %s3083_s4, %s3083_s4, %s3084_s26  }
  0x56   :  { %s2890_s27 = scalar_lea.hbm %s3775_s17, 32 }
  0x57   :  { %p2891_p4 = scmp.ne.s32.totalorder %s3775_s17, %s2890_s27  ;;  %p2894_p5 = scmp.lt.u32.totalorder %s2890_s27, %s3775_s17 }
  0x59   :  { %p2896_p6 = pnand %p2894_p5, %p2891_p4 }
  0x5b   :  { %2899 = shalt.err (!%p2896_p6)
}
  0x5c   :  { %s2900_s24 = scalar_lea.vmem %s160_s29, 32  ;;  %p2905_p8 = scmp.lt.s32.totalorder %s160_s29, %s160_s29 }
  0x5d   :  { %p2901_p7 = scmp.ne.s32.totalorder %s160_s29, %s2900_s24  ;;  %p2906_p9 = scmp.lt.s32.totalorder %s2900_s24, %s2900_s24 }
  0x5f   :  { %p2907_p10 = por %p2906_p9, %p2905_p8 }
  0x61   :  { %p2908_p11 = pnand %p2907_p10, %p2901_p7 }
  0x63   :  { %2911 = shalt.err (!%p2908_p11)
}
  0x64   :  { %165 = dma.hbm_to_vmem [thread:$0]  %s3775_s17, 32, %s160_s29, [#allocation17], %s3083_s4, %s3083_s4, %s3084_s26  }
  0x65   :  { %s3087_s6 = smov [#allocation2]   ;;  %s3088_s11 = smov [#allocation6]  }
  0x66   :  { %s48_s25 = sshll.u32 %s3087_s6, 4  ;;  %s69_s30 = sshll.u32 %s3088_s11, 4  ;;  %s49_s25 = int_to_ptr.vmem [resolvable:$true] %s48_s25  ;;  %s70_s30 = int_to_ptr.vmem [resolvable:$true] %s69_s30 }
  0x67   :  { %s3794_s28 = sld [smem:[#allocation32_spill]] }
  0x6d   :  { %s2912_s27 = scalar_lea.hbm %s3794_s28, 16 }
  0x6e   :  { %p2913_p12 = scmp.ne.s32.totalorder %s3794_s28, %s2912_s27  ;;  %p2916_p13 = scmp.lt.u32.totalorder %s2912_s27, %s3794_s28 }
  0x70   :  { %p2918_p0 = pnand %p2916_p13, %p2913_p12 }
  0x72   :  { %2921 = shalt.err (!%p2918_p0)
}
  0x73   :  { %s2922_s17 = scalar_lea.vmem %s49_s25, 16  ;;  %s2926_s29 = scalar_lea.vmem %s49_s25, 32 }
  0x74   :  { %p2923_p1 = scmp.ne.s32.totalorder %s49_s25, %s2922_s17  ;;  %p2927_p2 = scmp.lt.s32.totalorder %s49_s25, %s49_s25 }
  0x75   :  { %p2928_p3 = scmp.lt.s32.totalorder %s2926_s29, %s2922_s17 }
  0x77   :  { %p2929_p4 = por %p2928_p3, %p2927_p2 }
  0x79   :  { %p2930_p5 = pnand %p2929_p4, %p2923_p1 }
  0x7b   :  { %2933 = shalt.err (!%p2930_p5)
}
  0x7c   :  { %51 = dma.hbm_to_vmem [thread:$0]  %s3794_s28, 16, %s49_s25, [#allocation3]  }
  0x7d   :  { %s2934_s11 = scalar_lea.hbm %s3765_s7, 32 }
  0x7e   :  { %p2935_p6 = scmp.ne.s32.totalorder %s3765_s7, %s2934_s11  ;;  %p2938_p7 = scmp.lt.u32.totalorder %s2934_s11, %s3765_s7 }
  0x80   :  { %p2940_p8 = pnand %p2938_p7, %p2935_p6 }
  0x82   :  { %2943 = shalt.err (!%p2940_p8)
}
  0x83   :  { %s2944_s23 = scalar_lea.vmem %s70_s30, 32  ;;  %p2949_p10 = scmp.lt.s32.totalorder %s70_s30, %s70_s30 }
  0x84   :  { %p2945_p9 = scmp.ne.s32.totalorder %s70_s30, %s2944_s23  ;;  %p2950_p11 = scmp.lt.s32.totalorder %s2944_s23, %s2944_s23 }
  0x86   :  { %p2951_p12 = por %p2950_p11, %p2949_p10 }
  0x88   :  { %p2952_p13 = pnand %p2951_p12, %p2945_p9 }
  0x8a   :  { %2955 = shalt.err (!%p2952_p13)
}
  0x8b   :  { %75 = dma.hbm_to_vmem [thread:$0]  %s3765_s7, 32, %s70_s30, [#allocation5], %s3083_s4, %s3083_s4, %s3084_s26  }
  0x8c   :  { %s3089_s1 = smov [#allocation9]   ;;  %s3090_s17 = smov [#allocation12]  }
  0x8d   :  { %s95_s5 = sshll.u32 %s3089_s1, 4  ;;  %s121_s29 = sshll.u32 %s3090_s17, 4  ;;  %s96_s5 = int_to_ptr.vmem [resolvable:$true] %s95_s5  ;;  %s122_s29 = int_to_ptr.vmem [resolvable:$true] %s121_s29 }
  0x8e   :  { %s2956_s2 = scalar_lea.hbm %s3768_s10, 32 }
  0x8f   :  { %p2957_p0 = scmp.ne.s32.totalorder %s3768_s10, %s2956_s2  ;;  %p2960_p1 = scmp.lt.u32.totalorder %s2956_s2, %s3768_s10 }
  0x91   :  { %p2962_p2 = pnand %p2960_p1, %p2957_p0 }
  0x93   :  { %2965 = shalt.err (!%p2962_p2)
}
  0x94   :  { %s2966_s7 = scalar_lea.vmem %s96_s5, 32  ;;  %p2971_p4 = scmp.lt.s32.totalorder %s96_s5, %s96_s5 }
  0x95   :  { %p2967_p3 = scmp.ne.s32.totalorder %s96_s5, %s2966_s7  ;;  %p2972_p5 = scmp.lt.s32.totalorder %s2966_s7, %s2966_s7 }
  0x97   :  { %p2973_p6 = por %p2972_p5, %p2971_p4 }
  0x99   :  { %p2974_p7 = pnand %p2973_p6, %p2967_p3 }
  0x9b   :  { %2977 = shalt.err (!%p2974_p7)
}
  0x9c   :  { %101 = dma.hbm_to_vmem [thread:$0]  %s3768_s10, 32, %s96_s5, [#allocation8], %s3083_s4, %s3083_s4, %s3084_s26  }
  0x9d   :  { %s2978_s25 = scalar_lea.hbm %s3771_s13, 32 }
  0x9e   :  { %p2979_p8 = scmp.ne.s32.totalorder %s3771_s13, %s2978_s25  ;;  %p2982_p9 = scmp.lt.u32.totalorder %s2978_s25, %s3771_s13 }
  0xa0   :  { %p2984_p10 = pnand %p2982_p9, %p2979_p8 }
  0xa2   :  { %2987 = shalt.err (!%p2984_p10)
}
  0xa3   :  { %s2988_s15 = scalar_lea.vmem %s122_s29, 32  ;;  %p2993_p12 = scmp.lt.s32.totalorder %s122_s29, %s122_s29 }
  0xa4   :  { %p2989_p11 = scmp.ne.s32.totalorder %s122_s29, %s2988_s15  ;;  %p2994_p13 = scmp.lt.s32.totalorder %s2988_s15, %s2988_s15 }
  0xa6   :  { %p2995_p0 = por %p2994_p13, %p2993_p12 }
  0xa8   :  { %p2996_p1 = pnand %p2995_p0, %p2989_p11 }
  0xaa   :  { %2999 = shalt.err (!%p2996_p1)
}
  0xab   :  { %127 = dma.hbm_to_vmem [thread:$0]  %s3771_s13, 32, %s122_s29, [#allocation11], %s3083_s4, %s3083_s4, %s3084_s26  }
  0xac   :  { %s3091_s2 = smov [#allocation15]   ;;  %s3092_s11 = smov [#allocation18]  }
  0xad   :  { %s147_s6 = sshll.u32 %s3091_s2, 4  ;;  %s174_s9 = sshll.u32 %s3092_s11, 4  ;;  %s148_s6 = int_to_ptr.vmem [resolvable:$true] %s147_s6  ;;  %s175_s9 = int_to_ptr.vmem [resolvable:$true] %s174_s9 }
  0xae   :  { %s3000_s30 = scalar_lea.hbm %s3774_s16, 32 }
  0xaf   :  { %p3001_p2 = scmp.ne.s32.totalorder %s3774_s16, %s3000_s30  ;;  %p3004_p3 = scmp.lt.u32.totalorder %s3000_s30, %s3774_s16 }
  0xb1   :  { %p3006_p4 = pnand %p3004_p3, %p3001_p2 }
  0xb3   :  { %3009 = shalt.err (!%p3006_p4)
}
  0xb4   :  { %s3010_s13 = scalar_lea.vmem %s148_s6, 32  ;;  %p3015_p6 = scmp.lt.s32.totalorder %s148_s6, %s148_s6 }
  0xb5   :  { %p3011_p5 = scmp.ne.s32.totalorder %s148_s6, %s3010_s13  ;;  %p3016_p7 = scmp.lt.s32.totalorder %s3010_s13, %s3010_s13 }
  0xb7   :  { %p3017_p8 = por %p3016_p7, %p3015_p6 }
  0xb9   :  { %p3018_p9 = pnand %p3017_p8, %p3011_p5 }
  0xbb   :  { %3021 = shalt.err (!%p3018_p9)
}
  0xbc   :  { %153 = dma.hbm_to_vmem [thread:$0]  %s3774_s16, 32, %s148_s6, [#allocation14], %s3083_s4, %s3083_s4, %s3084_s26  }
  0xbd   :  { %s3022_s24 = scalar_lea.hbm %s3777_s19, 16 }
  0xbe   :  { %p3023_p10 = scmp.ne.s32.totalorder %s3777_s19, %s3022_s24  ;;  %p3026_p11 = scmp.lt.u32.totalorder %s3022_s24, %s3777_s19 }
  0xc0   :  { %p3028_p12 = pnand %p3026_p11, %p3023_p10 }
  0xc2   :  { %3031 = shalt.err (!%p3028_p12)
}
  0xc3   :  { %s3032_s11 = scalar_lea.vmem %s175_s9, 16  ;;  %s3036_s3 = scalar_lea.vmem %s175_s9, 32 }
  0xc4   :  { %p3033_p13 = scmp.ne.s32.totalorder %s175_s9, %s3032_s11  ;;  %p3037_p0 = scmp.lt.s32.totalorder %s175_s9, %s175_s9 }
  0xc5   :  { %p3038_p1 = scmp.lt.s32.totalorder %s3036_s3, %s3032_s11 }
  0xc7   :  { %p3039_p2 = por %p3038_p1, %p3037_p0 }
  0xc9   :  { %p3040_p3 = pnand %p3039_p2, %p3033_p13 }
  0xcb   :  { %3043 = shalt.err (!%p3040_p3)
}
  0xcc   :  { %177 = dma.hbm_to_vmem [thread:$0]  %s3777_s19, 16, %s175_s9, [#allocation17]  }
  0xcd   :  { %s3093_s6 = smov [#allocation19]   ;;  %s3044_s0 = scalar_lea.hbm %s3779_s21, 16 }
  0xce   :  { %s186_s7 = sshll.u32 %s3093_s6, 4  ;;  %p3045_p4 = scmp.ne.s32.totalorder %s3779_s21, %s3044_s0  ;;  %s187_s7 = int_to_ptr.vmem [resolvable:$true] %s186_s7 }
  0xcf   :  { %p3048_p5 = scmp.lt.u32.totalorder %s3044_s0, %s3779_s21 }
  0xd1   :  { %p3050_p6 = pnand %p3048_p5, %p3045_p4 }
  0xd3   :  { %3053 = shalt.err (!%p3050_p6)
}
  0xd4   :  { %s3054_s28 = scalar_lea.vmem %s187_s7, 16  ;;  %s3058_s19 = scalar_lea.vmem %s187_s7, 32 }
  0xd5   :  { %p3055_p7 = scmp.ne.s32.totalorder %s187_s7, %s3054_s28  ;;  %p3059_p8 = scmp.lt.s32.totalorder %s187_s7, %s187_s7 }
  0xd6   :  { %p3060_p9 = scmp.lt.s32.totalorder %s3058_s19, %s3054_s28 }
  0xd8   :  { %p3061_p10 = por %p3060_p9, %p3059_p8 }
  0xda   :  { %p3062_p11 = pnand %p3061_p10, %p3055_p7 }
  0xdc   :  { %3065 = shalt.err (!%p3062_p11)
}
  0xdd   :  { %189 = dma.hbm_to_vmem [thread:$0]  %s3779_s21, 16, %s187_s7, [#allocation20]  }
  0xde   :  { %3066 = dma.done.wait [#allocation3], 16  }
  0xdf   :  { %3067 = vsyncadd [#allocation3], 4294967280 }
  0xe0   :  { %3068 = dma.done.wait [#allocation5], 48  }
  0xe1   :  { %3069 = vsyncadd [#allocation5], 4294967248 }
  0xe2   :  { %3070 = dma.done.wait [#allocation8], 64  }
  0xe3   :  { %3071 = vsyncadd [#allocation8], 4294967232 }
  0xe4   :  { %3072 = dma.done.wait [#allocation11], 64  }
  0xe5   :  { %3073 = vsyncadd [#allocation11], 4294967232 }
  0xe6   :  { %3074 = dma.done.wait [#allocation14], 64  }
  0xe7   :  { %3075 = vsyncadd [#allocation14], 4294967232 }
  0xe8   :  { %3076 = dma.done.wait [#allocation17], 48  }
  0xe9   :  { %3077 = vsyncadd [#allocation17], 4294967248 }
  0xea   :  { %3078 = dma.done.wait [#allocation20], 16  }
  0xeb   :  { %3079 = vsyncadd [#allocation20], 4294967280  ;;  %v3094_v0 = vmov 0   ;;  %s3795_s15 = sld [smem:[#allocation28_spill]]  ;;  %s3796_s5 = sld [smem:[#allocation30_spill]]  ;;  %vm252_vm0 = vcmask 1045504   ;;  %v229_v10 = vlaneseq }
  0xec   :  { %2701 = vset.pattern.permute.xlu0 %v3094_v0  ;;  %vm3095_vm1 = vmmov 1   ;;  %v3096_v9 = vmov 0.0   ;;  %vm245_vm3 = vcmask 244736   ;;  %s3797_s23 = sld [smem:[#allocation31_spill]]  ;;  %vm336_vm6 = vcmask 261120   ;;  %s3798_s29 = sld [smem:[#allocation34_spill]] }
  0xed   :  { %vm2672_vm2 = vmpackc.low %vm252_vm0, %vm3095_vm1  ;;  %2483 = vmatprep.subr.bf16.mxu1 %v3096_v9  ;;  %v230_v11 = vand.u32 127, %v229_v10  ;;  %vm3097_vm7 = vmmov 0   ;;  %v2310_v43 = vld [vmem:[#allocation2] ss:$0 sm:$0xff]  ;;  %v2311_v47 = vld [vmem:[#allocation4] ss:$0 sm:$0xff] }
  0xee   :  { %2487 = vmatprep.mubr.msk.bf16.mxu1 %vm3097_vm7, %v3096_v9  ;;  %v2312_v52 = vld [vmem:[#allocation6] ss:$0 sm:$0xff]  ;;  %s3098_s9 = smov 96   ;;  %vm490_vm8 = vcmask 130048   ;;  %s3799_s24 = sld [smem:[#allocation29_spill]]  ;;  %vm590_vm9 = vcmask 64512  }
  0xef   :  { %s3101_s21 = smov 80   ;;  %vm620_vm10 = vcmask 1043456   ;;  %s3102_s10 = smov 112   ;;  %vm1186_vm11 = vcmask 523264   ;;  %vm2163_vm12 = vcmask 1041409  }
  0xf1   :  { %v227_v1 = vld [vmem:[%s3795_s15] sm:$0xff]  ;;  %v228_v3 = vld [vmem:[%s3795_s15 + $0x8] sm:$0xff]  ;;  %v243_v5 = vld [vmem:[%s3796_s5 + $0x10] sm:$0xff]  ;;  %s3100_s15 = smov 64  }
  0xf2   :  { %v241_v2 = vld [vmem:[%s3796_s5] sm:$0xff]  ;;  %232 = vperm.xlu0 %2701, %v227_v1   ;;  %v242_v4 = vld [vmem:[%s3796_s5 + $0x8] sm:$0xff]  ;;  %v244_v7 = vld [vmem:[%s3796_s5 + $0x18] sm:$0x3f]  ;;  %s3103_s5 = smov 48  }
  0xf3   :  { %v2667_v6 = vpack.c.bf16 %v242_v4, %v241_v2  ;;  %v2671_v8 = vpack.c.bf16 %v244_v7, %v243_v5  ;;  %v331_v16 = vld [vmem:[%s3797_s23] sm:$0xff]  ;;  %v2713_v34 = vld [vmem:[%s3798_s29 + $0x8] sm:$0xff]   ;;  %v389_v7 = vshrl.u32 %v229_v10, 7 }
  0xf4   :  { %v2712_v33 = vld [vmem:[%s3798_s29] sm:$0xff]  }
  0xf5   :  { %2668 = vmatprep.subr.bf16.mxu0 %v2667_v6  ;;  %2484 = vmatpush3.bf16.msra.mxu1 %v2712_v33  ;;  %v380_v1 = vld [vmem:[%s3799_s24] sm:$0x3] }
  0xf6   :  { %235 = vperm.xlu0 %2701, %v228_v3   ;;  %2670 = vmatpush3.bf16.msra.mxu0 %v2667_v6  ;;  %v381_v2 = vcvt.s32.f32 %v380_v1  ;;  %v3099_v3 = vmov 1966171168  }
  0xf7   :  { %2673 = vmatprep.subr.msk.bf16.mxu0 %vm2672_vm2, %v2671_v8  ;;  %2485 = vmatprep.subr.bf16.mxu1 %v3096_v9  ;;  %v386_v4 = vunpack.c.l.s4 %v3099_v3 }
  0xf8   :  { %v382_v5 = vsub.f32 1.0, %v381_v2 }
  0xf9   :  { %2486 = vmatpush3.bf16.msra.mxu1 %v2713_v34  ;;  %v387_v6 = vunpack.c.0.s8 %v386_v4 }
  0xfa   :  { %2676 = vmatpush3.bf16.msk.msra.mxu0 %vm2672_vm2, %v2671_v8  ;;  %2497 = vmatprep.subr.bf16.mxu1 %v3096_v9  ;;  %v383_v8 = vmul.f32 -1e+09, %v382_v5 }
  0xfb   :  { %2491 = vmatprep.subr.bf16.mxu0 %v3096_v9 }
 0x171   :  { %v233_v12 = vpop.permute.xlu0 %232 }
 0x172   :  { %vm237_vm4 = vcmp.eq.s32.totalorder %v230_v11, %v233_v12 }
 0x173   :  { %v239_v13 = vsel %vm237_vm4, 1.0, %v3096_v9 }
 0x174   :  { %2480 = vmatprep.mubr.msk.f32.mxu0 %vm245_vm3, %v239_v13  ;;  %v409_v13 = vsub.s32 0, %v389_v7 }
 0x175   :  { %v236_v14 = vpop.permute.xlu0 %235 }
 0x176   :  { %vm238_vm5 = vcmp.eq.s32.totalorder %v230_v11, %v236_v14  ;;  %v390_v11 = vsub.s32 %v387_v6, %v389_v7 }
 0x177   :  { %v240_v15 = vsel %vm238_vm5, 1.0, %v3096_v9 }
 0x178   :  { %2481 = vmatmul.mubr.msk.f32.vlgmr.msra.gmra.mrb[0].mxu0 %vm245_vm3, %v240_v15  ;;  %v391_v12 = vrot.slane %v383_v8, %v390_v11 }
 0x179   :  { %2493 = vmatprep.mubr.msk.bf16.mxu0 %vm3097_vm7, %v3096_v9 }
 0x17a   :  { %v399_v14 = vrot.slane %v391_v12, %v390_v11  ;;  %v392_v15 = vcombine.high %v391_v12, %v391_v12 }
 0x24b   :  { %v2482_v17 = vpop.f32.mrb[0].mxu0 }
 0x24c   :  { %v322_v18 = vpop.f32.mrb[1].mxu0  ;;  %v333_v20 = vadd.f32 %v2482_v17, %v331_v16  ;;  %v406_v17 = vrot.slane %v392_v15, %v390_v11 }
 0x24d   :  { %v332_v19 = vadd.f32 %v331_v16, %v322_v18  ;;  %v3462_v16 = vrot.slane %v399_v14, %v409_v13 }
 0x24e   :  { %v340_v22 = vsel %vm336_vm6, %v333_v20, 0.0 }
 0x24f   :  { %v337_v21 = vsel %vm336_vm6, %v332_v19, 0.0 }
 0x250   :  { %338 = vadd.xlane.f32.xlu1 %v337_v21 }
 0x254   :  { %341 = vadd.xlane.f32.xlu1 %v340_v22 }
 0x2dd   :  { %v339_v23 = vpop.xlane.xlu1 %338 }
 0x2de   :  { %v344_v24 = vmul.f32 0.03125, %v339_v23 }
 0x2e0   :  { %v346_v25 = vsub.f32 %v332_v19, %v344_v24  ;;  %v3465_v24 = vrot.slane %v406_v17, %v409_v13 }
 0x2e1   :  { %v342_v26 = vpop.xlane.xlu1 %341 }
 0x2e2   :  { %v345_v27 = vmul.f32 0.03125, %v342_v26  ;;  %v348_v28 = vmul.f32 %v346_v25, %v346_v25 }
 0x2e4   :  { %v347_v29 = vsub.f32 %v333_v20, %v345_v27  ;;  %v350_v30 = vsel %vm336_vm6, %v348_v28, 0.0 }
 0x2e5   :  { %351 = vadd.xlane.f32.xlu0 %v350_v30 }
 0x2e6   :  { %v349_v31 = vmul.f32 %v347_v29, %v347_v29 }
 0x2e8   :  { %v353_v32 = vsel %vm336_vm6, %v349_v31, 0.0 }
 0x2e9   :  { %354 = vadd.xlane.f32.xlu1 %v353_v32 }
 0x372   :  { %v352_v35 = vpop.xlane.xlu0 %351 }
 0x373   :  { %v356_v36 = vmul.f32 0.03125, %v352_v35 }
 0x375   :  { %v358_v37 = vadd.f32 1e-12, %v356_v36 }
 0x376   :  { %v355_v38 = vpop.xlane.xlu1 %354 }
 0x377   :  { %2736 = vrsqrt.f32 %v358_v37  ;;  %v357_v39 = vmul.f32 0.03125, %v355_v38 }
 0x379   :  { %v359_v40 = vadd.f32 1e-12, %v357_v39 }
 0x37b   :  { %2738 = vrsqrt.f32 %v359_v40 }
 0x381   :  { %v2737_v41 = vpop.eup %2736 }
 0x382   :  { %v362_v42 = vmul.f32 %v2737_v41, %v346_v25 }
 0x384   :  { %v370_v46 = vmul.f32 %v2310_v43, %v362_v42 }
 0x385   :  { %v2739_v44 = vpop.eup %2738 }
 0x386   :  { %v363_v45 = vmul.f32 %v2739_v44, %v347_v29  ;;  %v3429_v49 = vadd.f32 %v2311_v47, %v370_v46 }
 0x388   :  { %v371_v48 = vmul.f32 %v2310_v43, %v363_v45 }
 0x38a   :  { %v3431_v50 = vadd.f32 %v2311_v47, %v371_v48 }
 0x38c   :  { %v421_v51 = vpack.c.bf16 %v3431_v50, %v3429_v49 }
 0x38e   :  { %2488 = vmatmul.mubr.msk.bf16.vlgmr.msra.gmra.mrb[0].mxu1 %vm336_vm6, %v421_v51 }
 0x38f   :  { %2499 = vmatprep.mubr.msk.bf16.mxu1 %vm3097_vm7, %v3096_v9 }
 0x461   :  { %v478_v53 = vpop.f32.mrb[0].mxu1 }
 0x462   :  { %v479_v54 = vadd.f32 %v2312_v52, %v478_v53  ;;  %v2489_v55 = vpop.f32.mrb[1].mxu1 }
 0x463   :  { %v481_v56 = vpop.f32.mrb[2].mxu1 }
 0x464   :  { %v3438_v57 = vpack.c.bf16 %v479_v54, %v479_v54  ;;  %v482_v58 = vadd.f32 %v2312_v52, %v481_v56  ;;  %v2490_v59 = vpop.f32.mrb[3].mxu1 }
 0x466   :  { %488 = vrot.lane.b32.xlu1 %v3438_v57, %s3098_s9  ;;  %v3442_v60 = vpack.c.bf16 %v482_v58, %v482_v58 }
 0x46a   :  { %538 = vrot.lane.b32.xlu1 %v3442_v60, %s3098_s9 }
 0x4d8   :  { %v489_v61 = vpop.permute.xlu1 %488 }
 0x4d9   :  { %v495_v62 = vsel %vm490_vm8, %v489_v61, 0 }
 0x4da   :  { %2492 = vmatpush3.bf16.xpose.msra.mxu0 %v495_v62 }
 0x4db   :  { %2503 = vmatprep.subr.bf16.mxu0 %v3096_v9 }
 0x4dc   :  { %v539_v63 = vpop.permute.xlu1 %538 }
 0x4dd   :  { %v544_v0 = vsel %vm490_vm8, %v539_v63, 0 }
 0x4de   :  { %2498 = vmatpush3.bf16.xpose.msra.mxu1 %v544_v0 }
 0x4df   :  { %2509 = vmatprep.subr.bf16.mxu1 %v3096_v9 }
 0x4e1   :  { %2494 = vmatmul.mubr.msk.bf16.vlgmr.msra.gmra.mrb[4].mxu0 %vm490_vm8, %v3438_v57 }
 0x4e2   :  { %2505 = vmatprep.mubr.msk.bf16.mxu0 %vm3097_vm7, %v3096_v9 }
 0x4e5   :  { %2500 = vmatmul.mubr.msk.bf16.vlgmr.msra.gmra.mrb[4].mxu1 %vm490_vm8, %v3442_v60 }
 0x4e6   :  { %2511 = vmatprep.mubr.msk.bf16.mxu1 %vm3097_vm7, %v3096_v9 }
 0x5b4   :  { %v531_v18 = vpop.f32.mrb[4].mxu0 }
 0x5b5   :  { %v586_v19 = vmul.f32 0.25, %v531_v18  ;;  %v2495_v20 = vpop.f32.mrb[5].mxu0 }
 0x5b6   :  { %v534_v21 = vpop.f32.mrb[6].mxu0 }
 0x5b7   :  { %v2496_v22 = vpop.f32.mrb[7].mxu0  ;;  %v588_v23 = vadd.f32 %v586_v19, %v3462_v16 }
 0x5b8   :  { %v580_v10 = vpop.f32.mrb[4].mxu1 }
 0x5b9   :  { %v587_v25 = vmul.f32 0.25, %v580_v10  ;;  %v2501_v26 = vpop.f32.mrb[5].mxu1  ;;  %v591_v27 = vsel %vm590_vm9, %v588_v23, -inf }
 0x5ba   :  { %592 = vmax.xlane.f32.xlu1 %v591_v27  ;;  %v583_v28 = vpop.f32.mrb[6].mxu1 }
 0x5bb   :  { %v2502_v29 = vpop.f32.mrb[7].mxu1  ;;  %v589_v30 = vadd.f32 %v587_v25, %v3465_v24 }
 0x5bd   :  { %v594_v31 = vsel %vm590_vm9, %v589_v30, -inf }
 0x5be   :  { %595 = vmax.xlane.f32.xlu0 %v594_v31 }
 0x5cb   :  { %664 = vrot.lane.b32.xlu1 %v3442_v60, %s3100_s15 }
 0x5d4   :  { %615 = vrot.lane.b32.xlu0 %v3438_v57, %s3100_s15 }
 0x5d8   :  { %714 = vrot.lane.b32.xlu0 %v3438_v57, %s3101_s21 }
 0x647   :  { %v593_v32 = vpop.xlane.xlu1 %592 }
 0x648   :  { %v597_v33 = vsub.f32 %v588_v23, %v593_v32 }
 0x64a   :  { %v599_v34 = vmul.f32 1.442695, %v597_v33 }
 0x64b   :  { %v665_v35 = vpop.permute.xlu1 %664  ;;  %v596_v36 = vpop.xlane.xlu0 %595 }
 0x64c   :  { %2740 = vpow2.f32 %v599_v34  ;;  %v670_v37 = vsel %vm620_vm10, %v665_v35, 0  ;;  %v598_v38 = vsub.f32 %v589_v30, %v596_v36 }
 0x64d   :  { %2510 = vmatpush3.bf16.msra.mxu1 %v670_v37 }
 0x64e   :  { %v601_v39 = vmul.f32 1.442695, %v598_v38  ;;  %2521 = vmatprep.subr.bf16.mxu1 %v3096_v9 }
 0x64f   :  { %v616_v40 = vpop.permute.xlu0 %615 }
 0x650   :  { %2742 = vpow2.f32 %v601_v39  ;;  %v622_v41 = vsel %vm620_vm10, %v616_v40, 0 }
 0x651   :  { %2504 = vmatpush3.bf16.msra.mxu0 %v622_v41 }
 0x652   :  { %2515 = vmatprep.subr.bf16.mxu0 %v3096_v9 }
 0x653   :  { %v715_v46 = vpop.permute.xlu0 %714 }
 0x654   :  { %v720_v56 = vsel %vm490_vm8, %v715_v46, 0  ;;  %v2715_v46 = vld [vmem:[%s3766_s8 + $0x8] sm:$0xff]  }
 0x656   :  { %v2741_v42 = vpop.eup %2740 }
 0x657   :  { %v603_v43 = vsel %vm590_vm9, %v2741_v42, 0.0 }
 0x658   :  { %604 = vadd.xlane.f32.xlu0 %v603_v43 }
 0x65a   :  { %v2743_v44 = vpop.eup %2742 }
 0x65b   :  { %v606_v45 = vsel %vm590_vm9, %v2743_v44, 0.0 }
 0x65c   :  { %607 = vadd.xlane.f32.xlu0 %v606_v45  ;;  %v2714_v45 = vld [vmem:[%s3766_s8] sm:$0xff]  }
 0x672   :  { %764 = vrot.lane.b32.xlu0 %v3442_v60, %s3101_s21 }
 0x676   :  { %712 = vrot.lane.b32.xlu0 %v3438_v57, %s3102_s10 }
 0x67a   :  { %762 = vrot.lane.b32.xlu0 %v3442_v60, %s3102_s10 }
 0x6e5   :  { %v605_v47 = vpop.xlane.xlu0 %604 }
 0x6e6   :  { %2744 = vrcp.f32 %v605_v47 }
 0x6e9   :  { %v608_v48 = vpop.xlane.xlu0 %607 }
 0x6ea   :  { %2746 = vrcp.f32 %v608_v48 }
 0x6ed   :  { %v765_v55 = vpop.permute.xlu0 %764 }
 0x6ee   :  { %v770_v61 = vsel %vm490_vm8, %v765_v55, 0 }
 0x6f0   :  { %v2745_v51 = vpop.eup %2744 }
 0x6f1   :  { %v611_v52 = vmul.f32 %v2745_v51, %v2741_v42  ;;  %v713_v62 = vpop.permute.xlu0 %712 }
 0x6f3   :  { %v613_v53 = vpack.c.bf16 %v611_v52, %v611_v52 }
 0x6f4   :  { %v2747_v54 = vpop.eup %2746 }
 0x6f5   :  { %v612_v58 = vmul.f32 %v2747_v54, %v2743_v44  ;;  %2506 = vmatmul.mubr.msk.bf16.vlgmr.msra.gmra.mrb[8].mxu0 %vm590_vm9, %v613_v53  ;;  %v763_v63 = vpop.permute.xlu0 %762 }
 0x6f6   :  { %2516 = vmatpush3.bf16.xpose.msra.mxu0 %v720_v56  ;;  %2517 = vmatprep.mubr.msk.bf16.mxu0 %vm3097_vm7, %v3096_v9 }
 0x6f7   :  { %v614_v59 = vpack.c.bf16 %v612_v58, %v612_v58  ;;  %2527 = vmatprep.subr.bf16.mxu0 %v3096_v9 }
 0x6f9   :  { %2512 = vmatmul.mubr.msk.bf16.vlgmr.msra.gmra.mrb[8].mxu1 %vm590_vm9, %v614_v59 }
 0x6fa   :  { %2522 = vmatpush3.bf16.xpose.msra.mxu1 %v770_v61  ;;  %2523 = vmatprep.mubr.msk.bf16.mxu1 %vm3097_vm7, %v3096_v9 }
 0x6fb   :  { %2533 = vmatprep.subr.bf16.mxu1 %v3096_v9 }
 0x6fd   :  { %2518 = vmatmul.mubr.msk.bf16.vlgmr.msra.gmra.mrb[12].mxu0 %vm490_vm8, %v713_v62 }
 0x6fe   :  { %2529 = vmatprep.mubr.msk.bf16.mxu0 %vm3097_vm7, %v3096_v9 }
 0x701   :  { %2524 = vmatmul.mubr.msk.bf16.vlgmr.msra.gmra.mrb[12].mxu1 %vm490_vm8, %v763_v63 }
 0x702   :  { %2535 = vmatprep.mubr.msk.bf16.mxu1 %vm3097_vm7, %v3096_v9 }
 0x7c8   :  { %v3504_v0 = vpop.f32.mrb[8].mxu0 }
 0x7c9   :  { %v2507_v1 = vpop.f32.mrb[9].mxu0 }
 0x7ca   :  { %v661_v2 = vpop.f32.mrb[10].mxu0 }
 0x7cb   :  { %v2508_v3 = vpop.f32.mrb[11].mxu0 }
 0x7cc   :  { %v3506_v4 = vpop.f32.mrb[8].mxu1  ;;  %v2324_v3 = vld [vmem:[#allocation7] ss:$0 sm:$0xff] }
 0x7cd   :  { %v2513_v5 = vpop.f32.mrb[9].mxu1 }
 0x7ce   :  { %v709_v6 = vpop.f32.mrb[10].mxu1 }
 0x7cf   :  { %v2514_v7 = vpop.f32.mrb[11].mxu1 }
 0x7d0   :  { %v756_v8 = vpop.f32.mrb[12].mxu0 }
 0x7d1   :  { %v812_v11 = vmul.f32 0.25, %v756_v8  ;;  %v2519_v12 = vpop.f32.mrb[13].mxu0 }
 0x7d2   :  { %v759_v13 = vpop.f32.mrb[14].mxu0 }
 0x7d3   :  { %v2520_v14 = vpop.f32.mrb[15].mxu0  ;;  %v814_v15 = vadd.f32 %v812_v11, %v3462_v16 }
 0x7d4   :  { %v806_v17 = vpop.f32.mrb[12].mxu1 }
 0x7d5   :  { %v813_v18 = vmul.f32 0.25, %v806_v17  ;;  %v2525_v19 = vpop.f32.mrb[13].mxu1  ;;  %v816_v20 = vsel %vm590_vm9, %v814_v15, -inf }
 0x7d6   :  { %817 = vmax.xlane.f32.xlu1 %v816_v20  ;;  %v809_v21 = vpop.f32.mrb[14].mxu1 }
 0x7d7   :  { %v2526_v22 = vpop.f32.mrb[15].mxu1  ;;  %v815_v23 = vadd.f32 %v813_v18, %v3465_v24 }
 0x7d9   :  { %v819_v10 = vsel %vm590_vm9, %v815_v23, -inf }
 0x7da   :  { %820 = vmax.xlane.f32.xlu0 %v819_v10 }
 0x863   :  { %v818_v25 = vpop.xlane.xlu1 %817 }
 0x864   :  { %v822_v26 = vsub.f32 %v814_v15, %v818_v25  ;;  %v2717_v25 = vld [vmem:[%s3770_s12 + $0x8] sm:$0xff]  }
 0x866   :  { %v824_v27 = vmul.f32 1.442695, %v822_v26 }
 0x867   :  { %v821_v28 = vpop.xlane.xlu0 %820 }
 0x868   :  { %2748 = vpow2.f32 %v824_v27  ;;  %v823_v29 = vsub.f32 %v815_v23, %v821_v28 }
 0x86a   :  { %v826_v30 = vmul.f32 1.442695, %v823_v29 }
 0x86c   :  { %2750 = vpow2.f32 %v826_v30 }
 0x872   :  { %v2749_v31 = vpop.eup %2748 }
 0x873   :  { %v828_v32 = vsel %vm590_vm9, %v2749_v31, 0.0 }
 0x874   :  { %829 = vadd.xlane.f32.xlu0 %v828_v32 }
 0x876   :  { %v2751_v33 = vpop.eup %2750 }
 0x877   :  { %v831_v34 = vsel %vm590_vm9, %v2751_v33, 0.0 }
 0x878   :  { %832 = vadd.xlane.f32.xlu1 %v831_v34  ;;  %v2328_v34 = vld [vmem:[#allocation9] ss:$0 sm:$0xff] }
 0x889   :  { %888 = vrot.lane.b32.xlu1 %v3442_v60, %s3103_s5 }
 0x88a   :  { %840 = vrot.lane.b32.xlu0 %v3438_v57, %s3103_s5 }
 0x901   :  { %v830_v35 = vpop.xlane.xlu0 %829 }
 0x902   :  { %2752 = vrcp.f32 %v830_v35 }
 0x905   :  { %v833_v36 = vpop.xlane.xlu1 %832  ;;  %v841_v37 = vpop.permute.xlu0 %840 }
 0x906   :  { %2754 = vrcp.f32 %v833_v36  ;;  %v846_v38 = vsel %vm620_vm10, %v841_v37, 0 }
 0x907   :  { %2528 = vmatpush3.bf16.msra.mxu0 %v846_v38  ;;  %v2329_v38 = vld [vmem:[#allocation10] ss:$0 sm:$0xff] }
 0x908   :  { %2539 = vmatprep.subr.bf16.mxu0 %v3096_v9 }
 0x909   :  { %v889_v39 = vpop.permute.xlu1 %888 }
 0x90a   :  { %v894_v40 = vsel %vm620_vm10, %v889_v39, 0 }
 0x90b   :  { %2534 = vmatpush3.bf16.msra.mxu1 %v894_v40 }
 0x90c   :  { %v2753_v41 = vpop.eup %2752  ;;  %2547 = vmatprep.subr.bf16.mxu1 %v3096_v9 }
 0x90d   :  { %v836_v60 = vmul.f32 %v2753_v41, %v2749_v31 }
 0x90f   :  { %v838_v42 = vpack.c.bf16 %v836_v60, %v836_v60 }
 0x910   :  { %v2755_v57 = vpop.eup %2754 }
 0x911   :  { %v837_v43 = vmul.f32 %v2755_v57, %v2751_v33  ;;  %2530 = vmatmul.mubr.msk.bf16.vlgmr.msra.gmra.mrb[16].mxu0 %vm590_vm9, %v838_v42  ;;  %v2718_v42 = vld [vmem:[%s3772_s14] sm:$0xff]   ;;  %v2719_v57 = vld [vmem:[%s3772_s14 + $0x8] sm:$0xff]  }
 0x912   :  { %2543 = vmatprep.mubr.msk.bf16.mxu0 %vm3097_vm7, %v3096_v9  ;;  %2540 = vmatpush3.bf16.msra.mxu0 %v2714_v45  ;;  %v2330_v45 = vld [vmem:[#allocation12] ss:$0 sm:$0xff] }
 0x913   :  { %v839_v44 = vpack.c.bf16 %v837_v43, %v837_v43  ;;  %2541 = vmatprep.subr.bf16.mxu0 %v3096_v9  ;;  %v2720_v43 = vld [vmem:[%s3772_s14 + $0x10] sm:$0xff]  }
 0x915   :  { %2536 = vmatmul.mubr.msk.bf16.vlgmr.msra.gmra.mrb[16].mxu1 %vm590_vm9, %v839_v44  ;;  %v2721_v44 = vld [vmem:[%s3772_s14 + $0x18] sm:$0xff]  }
 0x916   :  { %2551 = vmatprep.mubr.msk.bf16.mxu1 %vm3097_vm7, %v3096_v9  ;;  %2542 = vmatpush3.bf16.msra.mxu0 %v2715_v46 }
 0x917   :  { %2555 = vmatprep.subr.bf16.mxu0 %v3096_v9 }
 0x9e4   :  { %v882_v47 = vpop.f32.mrb[16].mxu0 }
 0x9e5   :  { %v2531_v48 = vpop.f32.mrb[17].mxu0 }
 0x9e6   :  { %v885_v51 = vpop.f32.mrb[18].mxu0 }
 0x9e7   :  { %v2532_v52 = vpop.f32.mrb[19].mxu0 }
 0x9e8   :  { %v930_v53 = vpop.f32.mrb[16].mxu1 }
 0x9e9   :  { %v2702_v54 = vpack.i.bf16 %v930_v53, %v882_v47  ;;  %v2537_v55 = vpop.f32.mrb[17].mxu1 }
 0x9ea   :  { %v933_v56 = vpop.f32.mrb[18].mxu1 }
 0x9eb   :  { %2703 = vrot.lane.b32.xlu1 %v2702_v54, %s3083_s4  ;;  %v2538_v58 = vpop.f32.mrb[19].mxu1 }
 0xa5d   :  { %v2704_v59 = vpop.permute.xlu1 %2703 }
 0xa5e   :  { %v2706_v61 = vunpack.i.h.bf16 %v2704_v59  ;;  %v2705_v62 = vunpack.i.l.bf16 %v2704_v59 }
 0xa60   :  { %v945_v63 = vsel %vm490_vm8, %v3506_v4, %v2706_v61  ;;  %v944_v1 = vsel %vm490_vm8, %v3504_v0, %v2705_v62 }
 0xa61   :  { %v950_v2 = vpack.c.bf16 %v945_v63, %v944_v1 }
 0xa63   :  { %2544 = vmatmul.mubr.msk.bf16.vlgmr.msra.gmra.mrb[20].mxu0 %vm336_vm6, %v950_v2 }
 0xa64   :  { %2563 = vmatprep.mubr.msk.bf16.mxu0 %vm3097_vm7, %v3096_v9  ;;  %2556 = vmatpush3.bf16.msra.mxu0 %v2718_v42 }
 0xa65   :  { %2557 = vmatprep.subr.bf16.mxu0 %v3096_v9 }
 0xa68   :  { %2558 = vmatpush3.bf16.msra.mxu0 %v2719_v57 }
 0xa69   :  { %2559 = vmatprep.subr.bf16.mxu0 %v3096_v9 }
 0xa6c   :  { %2560 = vmatpush3.bf16.msra.mxu0 %v2720_v43 }
 0xa6d   :  { %2561 = vmatprep.subr.bf16.mxu0 %v3096_v9 }
 0xa70   :  { %2562 = vmatpush3.bf16.msra.mxu0 %v2721_v44 }
 0xa71   :  { %2581 = vmatprep.subr.bf16.mxu0 %v3096_v9 }
 0xb36   :  { %v1007_v5 = vpop.f32.mrb[20].mxu0 }
 0xb37   :  { %v1008_v6 = vadd.f32 %v2324_v3, %v1007_v5  ;;  %v2545_v7 = vpop.f32.mrb[21].mxu0 }
 0xb38   :  { %v1010_v8 = vpop.f32.mrb[22].mxu0 }
 0xb39   :  { %v1011_v11 = vadd.f32 %v2324_v3, %v1010_v8  ;;  %v2546_v12 = vpop.f32.mrb[23].mxu0  ;;  %v1014_v13 = vadd.f32 %v1008_v6, %v3429_v49 }
 0xb3b   :  { %v1018_v4 = vsel %vm336_vm6, %v1014_v13, 0.0  ;;  %v1015_v14 = vadd.f32 %v1011_v11, %v3431_v50  ;;  %v2716_v50 = vld [vmem:[%s3770_s12] sm:$0xff]  }
 0xb3c   :  { %1019 = vadd.xlane.f32.xlu0 %v1018_v4  ;;  %2548 = vmatpush3.bf16.msra.mxu1 %v2716_v50 }
 0xb3d   :  { %v1021_v0 = vsel %vm336_vm6, %v1015_v14, 0.0  ;;  %2549 = vmatprep.subr.bf16.mxu1 %v3096_v9 }
 0xb3e   :  { %1022 = vadd.xlane.f32.xlu1 %v1021_v0 }
 0xb40   :  { %2550 = vmatpush3.bf16.msra.mxu1 %v2717_v25 }
 0xb41   :  { %2567 = vmatprep.subr.bf16.mxu1 %v3096_v9 }
 0xbc9   :  { %v1020_v15 = vpop.xlane.xlu0 %1019 }
 0xbca   :  { %v1024_v17 = vmul.f32 0.03125, %v1020_v15 }
 0xbcb   :  { %v1023_v18 = vpop.xlane.xlu1 %1022 }
 0xbcc   :  { %v1026_v19 = vsub.f32 %v1014_v13, %v1024_v17  ;;  %v1025_v20 = vmul.f32 0.03125, %v1023_v18 }
 0xbce   :  { %v1027_v21 = vsub.f32 %v1015_v14, %v1025_v20  ;;  %v1028_v22 = vmul.f32 %v1026_v19, %v1026_v19  ;;  %v2334_v14 = vld [vmem:[#allocation13] ss:$0 sm:$0xff] }
 0xbd0   :  { %v1030_v23 = vsel %vm336_vm6, %v1028_v22, 0.0  ;;  %v1029_v10 = vmul.f32 %v1027_v21, %v1027_v21 }
 0xbd1   :  { %1031 = vadd.xlane.f32.xlu0 %v1030_v23 }
 0xbd2   :  { %v1033_v49 = vsel %vm336_vm6, %v1029_v10, 0.0 }
 0xbd5   :  { %1034 = vadd.xlane.f32.xlu0 %v1033_v49 }
 0xc5e   :  { %v1032_v26 = vpop.xlane.xlu0 %1031 }
 0xc5f   :  { %v1036_v27 = vmul.f32 0.03125, %v1032_v26 }
 0xc61   :  { %v1038_v28 = vadd.f32 1e-12, %v1036_v27 }
 0xc62   :  { %v1035_v29 = vpop.xlane.xlu0 %1034 }
 0xc63   :  { %2756 = vrsqrt.f32 %v1038_v28  ;;  %v1037_v30 = vmul.f32 0.03125, %v1035_v29 }
 0xc65   :  { %v1039_v31 = vadd.f32 1e-12, %v1037_v30 }
 0xc67   :  { %2758 = vrsqrt.f32 %v1039_v31 }
 0xc6d   :  { %v2757_v32 = vpop.eup %2756 }
 0xc6e   :  { %v1042_v33 = vmul.f32 %v2757_v32, %v1026_v19 }
 0xc70   :  { %v1050_v36 = vmul.f32 %v2328_v34, %v1042_v33  ;;  %v2722_v33 = vld [vmem:[%s3798_s29 + $0x10] sm:$0xff]  }
 0xc71   :  { %v2759_v35 = vpop.eup %2758 }
 0xc72   :  { %v1043_v37 = vmul.f32 %v2759_v35, %v1027_v21  ;;  %v1058_v40 = vadd.f32 %v2329_v38, %v1050_v36 }
 0xc74   :  { %v1051_v39 = vmul.f32 %v2328_v34, %v1043_v37  ;;  %v2723_v34 = vld [vmem:[%s3798_s29 + $0x18] sm:$0xff]  }
 0xc76   :  { %v1059_v41 = vadd.f32 %v2329_v38, %v1051_v39 }
 0xc78   :  { %v1064_v60 = vpack.c.bf16 %v1059_v41, %v1058_v40 }
 0xc7a   :  { %2552 = vmatmul.mubr.msk.bf16.vlgmr.msra.gmra.mrb[20].mxu1 %vm336_vm6, %v1064_v60  ;;  %v2340_v60 = vld [vmem:[#allocation15] ss:$0 sm:$0xff] }
 0xc7b   :  { %2571 = vmatprep.mubr.msk.bf16.mxu1 %vm3097_vm7, %v3096_v9  ;;  %2568 = vmatpush3.bf16.msra.mxu1 %v2722_v33 }
 0xc7c   :  { %2569 = vmatprep.subr.bf16.mxu1 %v3096_v9 }
 0xc7f   :  { %2570 = vmatpush3.bf16.msra.mxu1 %v2723_v34 }
 0xc80   :  { %2575 = vmatprep.subr.bf16.mxu1 %v3096_v9 }
 0xd4d   :  { %v1121_v46 = vpop.f32.mrb[20].mxu1 }
 0xd4e   :  { %v1122_v47 = vadd.f32 %v2330_v45, %v1121_v46  ;;  %v2553_v48 = vpop.f32.mrb[21].mxu1 }
 0xd4f   :  { %v1124_v51 = vpop.f32.mrb[22].mxu1 }
 0xd50   :  { %v1128_v52 = vmul.f32 %v1122_v47, %v1122_v47  ;;  %v1125_v53 = vadd.f32 %v2330_v45, %v1124_v51  ;;  %v2554_v54 = vpop.f32.mrb[23].mxu1  ;;  %v2341_v45 = vld [vmem:[#allocation16] ss:$0 sm:$0xff] }
 0xd52   :  { %v1130_v55 = vmul.f32 %v1128_v52, %v1122_v47  ;;  %v1129_v56 = vmul.f32 %v1125_v53, %v1125_v53  ;;  %v2346_v52 = vld [vmem:[#allocation6 + $0x1] ss:$0 sm:$0xff] }
 0xd54   :  { %v1132_v58 = vmul.f32 0.044715, %v1130_v55  ;;  %v1131_v59 = vmul.f32 %v1129_v56, %v1125_v53 }
 0xd56   :  { %v1134_v61 = vadd.f32 %v1132_v58, %v1122_v47  ;;  %v1133_v62 = vmul.f32 0.044715, %v1131_v59 }
 0xd58   :  { %v1136_v63 = vmul.f32 0.7978846, %v1134_v61  ;;  %v1135_v1 = vadd.f32 %v1133_v62, %v1125_v53 }
 0xd5a   :  { %2760 = vtanh.f32 %v1136_v63  ;;  %v1137_v2 = vmul.f32 0.7978846, %v1135_v1 }
 0xd5c   :  { %2762 = vtanh.f32 %v1137_v2 }
 0xd64   :  { %v2761_v3 = vpop.eup %2760 }
 0xd65   :  { %v1140_v5 = vadd.f32 1.0, %v2761_v3 }
 0xd66   :  { %v2763_v6 = vpop.eup %2762 }
 0xd67   :  { %v1142_v7 = vmul.f32 0.5, %v1140_v5  ;;  %v1141_v8 = vadd.f32 1.0, %v2763_v6 }
 0xd69   :  { %v1143_v11 = vmul.f32 0.5, %v1141_v8  ;;  %v1144_v12 = vmul.f32 %v1142_v7, %v1122_v47 }
 0xd6b   :  { %v1145_v13 = vmul.f32 %v1143_v11, %v1125_v53 }
 0xd6d   :  { %v1154_v4 = vpack.c.bf16 %v1145_v13, %v1144_v12 }
 0xd6f   :  { %2564 = vmatmul.mubr.msk.bf16.vlgmr.msra.gmra.mrb[24].mxu0 %vm1186_vm11, %v1154_v4 }
 0xd70   :  { %2583 = vmatprep.mubr.msk.bf16.mxu0 %vm3097_vm7, %v3096_v9 }
 0xe42   :  { %v1224_v0 = vpop.f32.mrb[24].mxu0 }
 0xe43   :  { %v1225_v15 = vadd.f32 %v2334_v14, %v1224_v0  ;;  %v2565_v17 = vpop.f32.mrb[25].mxu0 }
 0xe44   :  { %v1227_v18 = vpop.f32.mrb[26].mxu0 }
 0xe45   :  { %v1228_v19 = vadd.f32 %v2334_v14, %v1227_v18  ;;  %v2566_v20 = vpop.f32.mrb[27].mxu0  ;;  %v1231_v21 = vadd.f32 %v1225_v15, %v1058_v40 }
 0xe47   :  { %v1235_v22 = vsel %vm336_vm6, %v1231_v21, 0.0  ;;  %v1232_v23 = vadd.f32 %v1228_v19, %v1059_v41 }
 0xe48   :  { %1236 = vadd.xlane.f32.xlu1 %v1235_v22 }
 0xe49   :  { %v1238_v10 = vsel %vm336_vm6, %v1232_v23, 0.0 }
 0xe4a   :  { %1239 = vadd.xlane.f32.xlu0 %v1238_v10 }
 0xed5   :  { %v1237_v49 = vpop.xlane.xlu1 %1236 }
 0xed6   :  { %v1241_v50 = vmul.f32 0.03125, %v1237_v49 }
 0xed7   :  { %v1240_v25 = vpop.xlane.xlu0 %1239 }
 0xed8   :  { %v1243_v26 = vsub.f32 %v1231_v21, %v1241_v50  ;;  %v1242_v27 = vmul.f32 0.03125, %v1240_v25 }
 0xeda   :  { %v1244_v28 = vsub.f32 %v1232_v23, %v1242_v27  ;;  %v1245_v29 = vmul.f32 %v1243_v26, %v1243_v26 }
 0xedc   :  { %v1247_v30 = vsel %vm336_vm6, %v1245_v29, 0.0  ;;  %v1246_v31 = vmul.f32 %v1244_v28, %v1244_v28 }
 0xedd   :  { %1248 = vadd.xlane.f32.xlu1 %v1247_v30 }
 0xede   :  { %v1250_v32 = vsel %vm336_vm6, %v1246_v31, 0.0 }
 0xedf   :  { %1251 = vadd.xlane.f32.xlu0 %v1250_v32 }
 0xf6a   :  { %v1249_v35 = vpop.xlane.xlu1 %1248 }
 0xf6b   :  { %v1253_v36 = vmul.f32 0.03125, %v1249_v35 }
 0xf6c   :  { %v1252_v37 = vpop.xlane.xlu0 %1251 }
 0xf6d   :  { %v1255_v38 = vadd.f32 1e-12, %v1253_v36  ;;  %v1254_v39 = vmul.f32 0.03125, %v1252_v37 }
 0xf6f   :  { %2764 = vrsqrt.f32 %v1255_v38  ;;  %v1256_v40 = vadd.f32 1e-12, %v1254_v39 }
 0xf71   :  { %2766 = vrsqrt.f32 %v1256_v40 }
 0xf79   :  { %v2765_v41 = vpop.eup %2764 }
 0xf7a   :  { %v1259_v42 = vmul.f32 %v2765_v41, %v1243_v26 }
 0xf7b   :  { %v2767_v57 = vpop.eup %2766 }
 0xf7c   :  { %v1267_v43 = vmul.f32 %v2340_v60, %v1259_v42  ;;  %v1260_v44 = vmul.f32 %v2767_v57, %v1244_v28 }
 0xf7e   :  { %v1268_v46 = vmul.f32 %v2340_v60, %v1260_v44  ;;  %v3592_v47 = vadd.f32 %v2341_v45, %v1267_v43 }
 0xf80   :  { %v3594_v48 = vadd.f32 %v2341_v45, %v1268_v46 }
 0xf82   :  { %v1282_v51 = vpack.c.bf16 %v3594_v48, %v3592_v47 }
 0xf84   :  { %2572 = vmatmul.mubr.msk.bf16.vlgmr.msra.gmra.mrb[24].mxu1 %vm336_vm6, %v1282_v51 }
 0xf85   :  { %2577 = vmatprep.mubr.msk.bf16.mxu1 %vm3097_vm7, %v3096_v9 }
0x1057   :  { %v1340_v53 = vpop.f32.mrb[24].mxu1 }
0x1058   :  { %v1341_v54 = vadd.f32 %v2346_v52, %v1340_v53  ;;  %v2573_v55 = vpop.f32.mrb[25].mxu1 }
0x1059   :  { %v1343_v56 = vpop.f32.mrb[26].mxu1 }
0x105a   :  { %v3601_v58 = vpack.c.bf16 %v1341_v54, %v1341_v54  ;;  %v1344_v59 = vadd.f32 %v2346_v52, %v1343_v56  ;;  %v2574_v61 = vpop.f32.mrb[27].mxu1 }
0x105c   :  { %v3603_v62 = vpack.c.bf16 %v1344_v59, %v1344_v59  ;;  %1350 = vrot.lane.b32.xlu1 %v3601_v58, %s3098_s9 }
0x105e   :  { %1399 = vrot.lane.b32.xlu0 %v3603_v62, %s3098_s9 }
0x10ce   :  { %v1351_v63 = vpop.permute.xlu1 %1350 }
0x10cf   :  { %v1356_v1 = vsel %vm490_vm8, %v1351_v63, 0 }
0x10d0   :  { %2576 = vmatpush3.bf16.xpose.msra.mxu1 %v1356_v1  ;;  %v1400_v2 = vpop.permute.xlu0 %1399 }
0x10d1   :  { %v1405_v3 = vsel %vm490_vm8, %v1400_v2, 0  ;;  %2587 = vmatprep.subr.bf16.mxu1 %v3096_v9 }
0x10d2   :  { %2582 = vmatpush3.bf16.xpose.msra.mxu0 %v1405_v3 }
0x10d3   :  { %2593 = vmatprep.subr.bf16.mxu0 %v3096_v9 }
0x10d7   :  { %2578 = vmatmul.mubr.msk.bf16.vlgmr.msra.gmra.mrb[28].mxu1 %vm490_vm8, %v3601_v58 }
0x10d8   :  { %2589 = vmatprep.mubr.msk.bf16.mxu1 %vm3097_vm7, %v3096_v9 }
0x10d9   :  { %2584 = vmatmul.mubr.msk.bf16.vlgmr.msra.gmra.mrb[28].mxu0 %vm490_vm8, %v3603_v62 }
0x10da   :  { %2595 = vmatprep.mubr.msk.bf16.mxu0 %vm3097_vm7, %v3096_v9 }
0x11aa   :  { %v1392_v5 = vpop.f32.mrb[28].mxu1 }
0x11ab   :  { %v1447_v6 = vmul.f32 0.25, %v1392_v5  ;;  %v2579_v7 = vpop.f32.mrb[29].mxu1 }
0x11ac   :  { %v1395_v8 = vpop.f32.mrb[30].mxu1  ;;  %v1441_v11 = vpop.f32.mrb[28].mxu0 }
0x11ad   :  { %v1448_v12 = vmul.f32 0.25, %v1441_v11  ;;  %v2580_v13 = vpop.f32.mrb[31].mxu1  ;;  %v2585_v4 = vpop.f32.mrb[29].mxu0  ;;  %v1449_v14 = vadd.f32 %v1447_v6, %v3462_v16 }
0x11ae   :  { %v1444_v0 = vpop.f32.mrb[30].mxu0 }
0x11af   :  { %v2586_v15 = vpop.f32.mrb[31].mxu0  ;;  %v1451_v17 = vsel %vm590_vm9, %v1449_v14, -inf  ;;  %v1450_v18 = vadd.f32 %v1448_v12, %v3465_v24 }
0x11b0   :  { %1452 = vmax.xlane.f32.xlu1 %v1451_v17 }
0x11b1   :  { %v1454_v19 = vsel %vm590_vm9, %v1450_v18, -inf }
0x11b2   :  { %1455 = vmax.xlane.f32.xlu0 %v1454_v19 }
0x11c1   :  { %1475 = vrot.lane.b32.xlu1 %v3601_v58, %s3100_s15 }
0x123d   :  { %v1453_v20 = vpop.xlane.xlu1 %1452 }
0x123e   :  { %v1457_v21 = vsub.f32 %v1449_v14, %v1453_v20 }
0x123f   :  { %v1456_v22 = vpop.xlane.xlu0 %1455 }
0x1240   :  { %v1459_v23 = vmul.f32 1.442695, %v1457_v21  ;;  %v1458_v10 = vsub.f32 %v1450_v18, %v1456_v22 }
0x1241   :  { %v1476_v49 = vpop.permute.xlu1 %1475 }
0x1242   :  { %2768 = vpow2.f32 %v1459_v23  ;;  %v1461_v50 = vmul.f32 1.442695, %v1458_v10  ;;  %v1481_v25 = vsel %vm620_vm10, %v1476_v49, 0 }
0x1243   :  { %2588 = vmatpush3.bf16.msra.mxu1 %v1481_v25 }
0x1244   :  { %2770 = vpow2.f32 %v1461_v50  ;;  %2599 = vmatprep.subr.bf16.mxu1 %v3096_v9 }
0x124c   :  { %v2769_v26 = vpop.eup %2768 }
0x124d   :  { %v1463_v27 = vsel %vm590_vm9, %v2769_v26, 0.0 }
0x124e   :  { %v2771_v28 = vpop.eup %2770  ;;  %1464 = vadd.xlane.f32.xlu1 %v1463_v27 }
0x124f   :  { %v1466_v29 = vsel %vm590_vm9, %v2771_v28, 0.0 }
0x1250   :  { %1467 = vadd.xlane.f32.xlu0 %v1466_v29  ;;  %v2724_v29 = vld [vmem:[%s3766_s8 + $0x10] sm:$0xff]  }
0x125f   :  { %1573 = vrot.lane.b32.xlu1 %v3601_v58, %s3101_s21 }
0x1263   :  { %1623 = vrot.lane.b32.xlu1 %v3603_v62, %s3101_s21 }
0x1266   :  { %1523 = vrot.lane.b32.xlu0 %v3603_v62, %s3100_s15 }
0x1267   :  { %1621 = vrot.lane.b32.xlu1 %v3603_v62, %s3102_s10 }
0x126a   :  { %1571 = vrot.lane.b32.xlu0 %v3601_v58, %s3102_s10 }
0x12db   :  { %v1465_v30 = vpop.xlane.xlu1 %1464 }
0x12dc   :  { %2772 = vrcp.f32 %v1465_v30  ;;  %v2725_v30 = vld [vmem:[%s3766_s8 + $0x18] sm:$0xff]  }
0x12dd   :  { %v1468_v31 = vpop.xlane.xlu0 %1467 }
0x12de   :  { %2774 = vrcp.f32 %v1468_v31 }
0x12df   :  { %v1574_v34 = vpop.permute.xlu1 %1573 }
0x12e0   :  { %v1579_v41 = vsel %vm490_vm8, %v1574_v34, 0 }
0x12e1   :  { %v1524_v32 = vpop.permute.xlu0 %1523 }
0x12e2   :  { %v1529_v33 = vsel %vm620_vm10, %v1524_v32, 0 }
0x12e3   :  { %2594 = vmatpush3.bf16.msra.mxu0 %v1529_v33  ;;  %v1624_v40 = vpop.permute.xlu1 %1623 }
0x12e4   :  { %2605 = vmatprep.subr.bf16.mxu0 %v3096_v9  ;;  %v1629_v42 = vsel %vm490_vm8, %v1624_v40, 0 }
0x12e5   :  { %v1572_v57 = vpop.permute.xlu0 %1571 }
0x12e6   :  { %v2773_v35 = vpop.eup %2772 }
0x12e7   :  { %v1471_v36 = vmul.f32 %v2773_v35, %v2769_v26  ;;  %v1622_v43 = vpop.permute.xlu1 %1621 }
0x12e8   :  { %v2775_v37 = vpop.eup %2774 }
0x12e9   :  { %v1472_v38 = vmul.f32 %v2775_v37, %v2771_v28  ;;  %v1473_v39 = vpack.c.bf16 %v1471_v36, %v1471_v36 }
0x12eb   :  { %2590 = vmatmul.mubr.msk.bf16.vlgmr.msra.gmra.mrb[32].mxu1 %vm590_vm9, %v1473_v39  ;;  %v1474_v60 = vpack.c.bf16 %v1472_v38, %v1472_v38 }
0x12ec   :  { %2600 = vmatpush3.bf16.xpose.msra.mxu1 %v1579_v41  ;;  %2601 = vmatprep.mubr.msk.bf16.mxu1 %vm3097_vm7, %v3096_v9 }
0x12ed   :  { %2596 = vmatmul.mubr.msk.bf16.vlgmr.msra.gmra.mrb[32].mxu0 %vm590_vm9, %v1474_v60  ;;  %2611 = vmatprep.subr.bf16.mxu1 %v3096_v9 }
0x12ee   :  { %2606 = vmatpush3.bf16.xpose.msra.mxu0 %v1629_v42  ;;  %2607 = vmatprep.mubr.msk.bf16.mxu0 %vm3097_vm7, %v3096_v9 }
0x12ef   :  { %2617 = vmatprep.subr.bf16.mxu0 %v3096_v9 }
0x12f3   :  { %2602 = vmatmul.mubr.msk.bf16.vlgmr.msra.gmra.mrb[36].mxu1 %vm490_vm8, %v1572_v57 }
0x12f4   :  { %2613 = vmatprep.mubr.msk.bf16.mxu1 %vm3097_vm7, %v3096_v9 }
0x12f5   :  { %2608 = vmatmul.mubr.msk.bf16.vlgmr.msra.gmra.mrb[36].mxu0 %vm490_vm8, %v1622_v43 }
0x12f6   :  { %2619 = vmatprep.mubr.msk.bf16.mxu0 %vm3097_vm7, %v3096_v9 }
0x13be   :  { %v3659_v44 = vpop.f32.mrb[32].mxu1 }
0x13bf   :  { %v2591_v45 = vpop.f32.mrb[33].mxu1 }
0x13c0   :  { %v1520_v46 = vpop.f32.mrb[34].mxu1  ;;  %v3661_v51 = vpop.f32.mrb[32].mxu0  ;;  %v2362_v45 = vld [vmem:[#allocation7 + $0x1] ss:$0 sm:$0xff] }
0x13c1   :  { %v2592_v52 = vpop.f32.mrb[35].mxu1  ;;  %v2597_v53 = vpop.f32.mrb[33].mxu0 }
0x13c2   :  { %v1568_v54 = vpop.f32.mrb[34].mxu0 }
0x13c3   :  { %v2598_v55 = vpop.f32.mrb[35].mxu0 }
0x13c6   :  { %v1615_v56 = vpop.f32.mrb[36].mxu1 }
0x13c7   :  { %v1671_v59 = vmul.f32 0.25, %v1615_v56  ;;  %v2603_v61 = vpop.f32.mrb[37].mxu1 }
0x13c8   :  { %v1618_v63 = vpop.f32.mrb[38].mxu1  ;;  %v1665_v1 = vpop.f32.mrb[36].mxu0 }
0x13c9   :  { %v1672_v2 = vmul.f32 0.25, %v1665_v1  ;;  %v2604_v3 = vpop.f32.mrb[39].mxu1  ;;  %v2609_v5 = vpop.f32.mrb[37].mxu0  ;;  %v1673_v6 = vadd.f32 %v1671_v59, %v3462_v16 }
0x13ca   :  { %v1668_v7 = vpop.f32.mrb[38].mxu0 }
0x13cb   :  { %v2610_v8 = vpop.f32.mrb[39].mxu0  ;;  %v1675_v11 = vsel %vm590_vm9, %v1673_v6, -inf  ;;  %v1674_v12 = vadd.f32 %v1672_v2, %v3465_v24 }
0x13cc   :  { %1676 = vmax.xlane.f32.xlu0 %v1675_v11 }
0x13cd   :  { %v1678_v13 = vsel %vm590_vm9, %v1674_v12, -inf }
0x13ce   :  { %1679 = vmax.xlane.f32.xlu1 %v1678_v13 }
0x13df   :  { %1699 = vrot.lane.b32.xlu1 %v3601_v58, %s3103_s5 }
0x1459   :  { %v1677_v4 = vpop.xlane.xlu0 %1676 }
0x145a   :  { %v1681_v14 = vsub.f32 %v1673_v6, %v1677_v4 }
0x145b   :  { %v1680_v0 = vpop.xlane.xlu1 %1679 }
0x145c   :  { %v1683_v15 = vmul.f32 1.442695, %v1681_v14  ;;  %v1682_v17 = vsub.f32 %v1674_v12, %v1680_v0  ;;  %v2727_v12 = vld [vmem:[%s3770_s12 + $0x18] sm:$0xff]  }
0x145e   :  { %2776 = vpow2.f32 %v1683_v15  ;;  %v1685_v16 = vmul.f32 1.442695, %v1682_v17 }
0x145f   :  { %v1700_v18 = vpop.permute.xlu1 %1699 }
0x1460   :  { %2778 = vpow2.f32 %v1685_v16  ;;  %v1705_v19 = vsel %vm620_vm10, %v1700_v18, 0  ;;  %v2366_v18 = vld [vmem:[#allocation9 + $0x1] ss:$0 sm:$0xff] }
0x1461   :  { %2612 = vmatpush3.bf16.msra.mxu1 %v1705_v19 }
0x1462   :  { %2623 = vmatprep.subr.bf16.mxu1 %v3096_v9 }
0x1468   :  { %v2777_v24 = vpop.eup %2776 }
0x1469   :  { %v1687_v20 = vsel %vm590_vm9, %v2777_v24, 0.0 }
0x146a   :  { %v2779_v21 = vpop.eup %2778  ;;  %1688 = vadd.xlane.f32.xlu0 %v1687_v20 }
0x146b   :  { %v1690_v58 = vsel %vm590_vm9, %v2779_v21, 0.0 }
0x146e   :  { %1691 = vadd.xlane.f32.xlu0 %v1690_v58  ;;  %v2367_v58 = vld [vmem:[#allocation10 + $0x1] ss:$0 sm:$0xff] }
0x1484   :  { %1747 = vrot.lane.b32.xlu0 %v3603_v62, %s3103_s5 }
0x14f7   :  { %v1689_v22 = vpop.xlane.xlu0 %1688 }
0x14f8   :  { %2780 = vrcp.f32 %v1689_v22 }
0x14fb   :  { %v1692_v23 = vpop.xlane.xlu0 %1691 }
0x14fc   :  { %2782 = vrcp.f32 %v1692_v23 }
0x14ff   :  { %v1748_v10 = vpop.permute.xlu0 %1747 }
0x1500   :  { %v1753_v49 = vsel %vm620_vm10, %v1748_v10, 0 }
0x1501   :  { %2618 = vmatpush3.bf16.msra.mxu0 %v1753_v49 }
0x1502   :  { %v2781_v50 = vpop.eup %2780  ;;  %2631 = vmatprep.subr.bf16.mxu0 %v3096_v9 }
0x1503   :  { %v1695_v25 = vmul.f32 %v2781_v50, %v2777_v24  ;;  %v2728_v50 = vld [vmem:[%s3772_s14 + $0x20] sm:$0xff]  }
0x1505   :  { %v1697_v26 = vpack.c.bf16 %v1695_v25, %v1695_v25  ;;  %v2729_v25 = vld [vmem:[%s3772_s14 + $0x28] sm:$0xff]  }
0x1506   :  { %v2783_v27 = vpop.eup %2782 }
0x1507   :  { %v1696_v28 = vmul.f32 %v2783_v27, %v2779_v21  ;;  %2614 = vmatmul.mubr.msk.bf16.vlgmr.msra.gmra.mrb[40].mxu1 %vm590_vm9, %v1697_v26  ;;  %v2730_v26 = vld [vmem:[%s3772_s14 + $0x30] sm:$0xff]   ;;  %v2731_v27 = vld [vmem:[%s3772_s14 + $0x38] sm:$0xff]  }
0x1508   :  { %2627 = vmatprep.mubr.msk.bf16.mxu1 %vm3097_vm7, %v3096_v9  ;;  %2624 = vmatpush3.bf16.msra.mxu1 %v2724_v29 }
0x1509   :  { %v1698_v62 = vpack.c.bf16 %v1696_v28, %v1696_v28  ;;  %2625 = vmatprep.subr.bf16.mxu1 %v3096_v9  ;;  %v2372_v28 = vld [vmem:[#allocation12 + $0x1] ss:$0 sm:$0xff] }
0x150b   :  { %2620 = vmatmul.mubr.msk.bf16.vlgmr.msra.gmra.mrb[40].mxu0 %vm590_vm9, %v1698_v62 }
0x150c   :  { %2635 = vmatprep.mubr.msk.bf16.mxu0 %vm3097_vm7, %v3096_v9  ;;  %2626 = vmatpush3.bf16.msra.mxu1 %v2725_v30 }
0x150d   :  { %2639 = vmatprep.subr.bf16.mxu1 %v3096_v9 }
0x15da   :  { %v1741_v31 = vpop.f32.mrb[40].mxu1 }
0x15db   :  { %v2615_v32 = vpop.f32.mrb[41].mxu1 }
0x15dc   :  { %v1744_v33 = vpop.f32.mrb[42].mxu1 }
0x15dd   :  { %v2616_v34 = vpop.f32.mrb[43].mxu1 }
0x15de   :  { %v1789_v35 = vpop.f32.mrb[40].mxu0 }
0x15df   :  { %v2707_v36 = vpack.i.bf16 %v1789_v35, %v1741_v31  ;;  %v2621_v37 = vpop.f32.mrb[41].mxu0 }
0x15e0   :  { %v1792_v38 = vpop.f32.mrb[42].mxu0 }
0x15e1   :  { %v2622_v39 = vpop.f32.mrb[43].mxu0  ;;  %2708 = vrot.lane.b32.xlu1 %v2707_v36, %s3083_s4 }
0x1653   :  { %v2709_v40 = vpop.permute.xlu1 %2708 }
0x1654   :  { %v2711_v41 = vunpack.i.h.bf16 %v2709_v40  ;;  %v2710_v60 = vunpack.i.l.bf16 %v2709_v40 }
0x1656   :  { %v1804_v42 = vsel %vm490_vm8, %v3661_v51, %v2711_v41  ;;  %v1803_v57 = vsel %vm490_vm8, %v3659_v44, %v2710_v60 }
0x1657   :  { %v1810_v43 = vpack.c.bf16 %v1804_v42, %v1803_v57 }
0x1659   :  { %2628 = vmatmul.mubr.msk.bf16.vlgmr.msra.gmra.mrb[44].mxu1 %vm336_vm6, %v1810_v43 }
0x165a   :  { %2647 = vmatprep.mubr.msk.bf16.mxu1 %vm3097_vm7, %v3096_v9  ;;  %2640 = vmatpush3.bf16.msra.mxu1 %v2728_v50  ;;  %v2391_v50 = vld [vmem:[#allocation16 + $0x1] ss:$0 sm:$0xff] }
0x165b   :  { %2641 = vmatprep.subr.bf16.mxu1 %v3096_v9 }
0x165e   :  { %2642 = vmatpush3.bf16.msra.mxu1 %v2729_v25 }
0x165f   :  { %2643 = vmatprep.subr.bf16.mxu1 %v3096_v9 }
0x1662   :  { %2644 = vmatpush3.bf16.msra.mxu1 %v2730_v26 }
0x1663   :  { %2645 = vmatprep.subr.bf16.mxu1 %v3096_v9 }
0x1666   :  { %2646 = vmatpush3.bf16.msra.mxu1 %v2731_v27 }
0x172c   :  { %v1868_v46 = vpop.f32.mrb[44].mxu1 }
0x172d   :  { %v1869_v52 = vadd.f32 %v2362_v45, %v1868_v46  ;;  %v2629_v53 = vpop.f32.mrb[45].mxu1 }
0x172e   :  { %v1871_v54 = vpop.f32.mrb[46].mxu1 }
0x172f   :  { %v1872_v55 = vadd.f32 %v2362_v45, %v1871_v54  ;;  %v2630_v56 = vpop.f32.mrb[47].mxu1  ;;  %v1875_v59 = vadd.f32 %v1869_v52, %v3592_v47 }
0x1731   :  { %v1881_v51 = vsel %vm336_vm6, %v1875_v59, 0.0  ;;  %v1876_v61 = vadd.f32 %v1872_v55, %v3594_v48  ;;  %v2726_v48 = vld [vmem:[%s3770_s12 + $0x10] sm:$0xff]  }
0x1732   :  { %1882 = vadd.xlane.f32.xlu1 %v1881_v51  ;;  %2632 = vmatpush3.bf16.msra.mxu0 %v2726_v48 }
0x1733   :  { %v1884_v44 = vsel %vm336_vm6, %v1876_v61, 0.0  ;;  %2633 = vmatprep.subr.bf16.mxu0 %v3096_v9 }
0x1734   :  { %1885 = vadd.xlane.f32.xlu0 %v1884_v44 }
0x1736   :  { %2634 = vmatpush3.bf16.msra.mxu0 %v2727_v12 }
0x1737   :  { %2651 = vmatprep.subr.bf16.mxu0 %v3096_v9 }
0x17bf   :  { %v1883_v63 = vpop.xlane.xlu1 %1882 }
0x17c0   :  { %v1887_v1 = vmul.f32 0.03125, %v1883_v63 }
0x17c1   :  { %v1886_v2 = vpop.xlane.xlu0 %1885 }
0x17c2   :  { %v1889_v3 = vsub.f32 %v1875_v59, %v1887_v1  ;;  %v1888_v5 = vmul.f32 0.03125, %v1886_v2  ;;  %v2384_v59 = vld [vmem:[#allocation13 + $0x1] ss:$0 sm:$0xff] }
0x17c4   :  { %v1890_v6 = vsub.f32 %v1876_v61, %v1888_v5  ;;  %v1891_v7 = vmul.f32 %v1889_v3, %v1889_v3 }
0x17c6   :  { %v1893_v8 = vsel %vm336_vm6, %v1891_v7, 0.0  ;;  %v1892_v11 = vmul.f32 %v1890_v6, %v1890_v6 }
0x17c7   :  { %1894 = vadd.xlane.f32.xlu0 %v1893_v8 }
0x17c8   :  { %v1896_v47 = vsel %vm336_vm6, %v1892_v11, 0.0 }
0x17c9   :  { %1897 = vadd.xlane.f32.xlu1 %v1896_v47 }
0x1854   :  { %v1895_v13 = vpop.xlane.xlu0 %1894 }
0x1855   :  { %v1899_v4 = vmul.f32 0.03125, %v1895_v13 }
0x1856   :  { %v1898_v14 = vpop.xlane.xlu1 %1897 }
0x1857   :  { %v1901_v0 = vadd.f32 1e-12, %v1899_v4  ;;  %v1900_v15 = vmul.f32 0.03125, %v1898_v14 }
0x1859   :  { %2784 = vrsqrt.f32 %v1901_v0  ;;  %v1902_v17 = vadd.f32 1e-12, %v1900_v15 }
0x185b   :  { %2786 = vrsqrt.f32 %v1902_v17  ;;  %v2732_v17 = vld [vmem:[%s3776_s18] sm:$0xff]  }
0x1863   :  { %v2785_v16 = vpop.eup %2784 }
0x1864   :  { %v1905_v19 = vmul.f32 %v2785_v16, %v1889_v3  ;;  %v2733_v16 = vld [vmem:[%s3776_s18 + $0x8] sm:$0xff]  }
0x1865   :  { %v2787_v24 = vpop.eup %2786 }
0x1866   :  { %v1913_v20 = vmul.f32 %v2366_v18, %v1905_v19  ;;  %v1906_v21 = vmul.f32 %v2787_v24, %v1890_v6 }
0x1868   :  { %v1914_v22 = vmul.f32 %v2366_v18, %v1906_v21  ;;  %v1921_v23 = vadd.f32 %v2367_v58, %v1913_v20 }
0x186a   :  { %v1922_v10 = vadd.f32 %v2367_v58, %v1914_v22 }
0x186c   :  { %v1928_v49 = vpack.c.bf16 %v1922_v10, %v1921_v23 }
0x186e   :  { %2636 = vmatmul.mubr.msk.bf16.vlgmr.msra.gmra.mrb[44].mxu0 %vm336_vm6, %v1928_v49 }
0x186f   :  { %2655 = vmatprep.mubr.msk.bf16.mxu0 %vm3097_vm7, %v3096_v9  ;;  %2652 = vmatpush3.bf16.msra.mxu0 %v2732_v17 }
0x1870   :  { %2653 = vmatprep.subr.bf16.mxu0 %v3096_v9 }
0x1873   :  { %2654 = vmatpush3.bf16.msra.mxu0 %v2733_v16 }
0x1874   :  { %2659 = vmatprep.subr.bf16.mxu0 %v3096_v9 }
0x1941   :  { %v1986_v62 = vpop.f32.mrb[44].mxu0 }
0x1942   :  { %v1987_v29 = vadd.f32 %v2372_v28, %v1986_v62  ;;  %v2637_v30 = vpop.f32.mrb[45].mxu0 }
0x1943   :  { %v1989_v31 = vpop.f32.mrb[46].mxu0 }
0x1944   :  { %v1993_v32 = vmul.f32 %v1987_v29, %v1987_v29  ;;  %v1990_v33 = vadd.f32 %v2372_v28, %v1989_v31  ;;  %v2638_v34 = vpop.f32.mrb[47].mxu0 }
0x1946   :  { %v1995_v35 = vmul.f32 %v1993_v32, %v1987_v29  ;;  %v1994_v36 = vmul.f32 %v1990_v33, %v1990_v33 }
0x1948   :  { %v1997_v37 = vmul.f32 0.044715, %v1995_v35  ;;  %v1996_v38 = vmul.f32 %v1994_v36, %v1990_v33  ;;  %v2734_v36 = vld [vmem:[%s3778_s20] sm:$0xff]  }
0x194a   :  { %v1999_v39 = vadd.f32 %v1997_v37, %v1987_v29  ;;  %v1998_v40 = vmul.f32 0.044715, %v1996_v38  ;;  %v2735_v37 = vld [vmem:[%s3778_s20 + $0x8] sm:$0xff]   ;;  %v2392_v38 = vld [vmem:[#allocation18] ss:$0 sm:$0xff] }
0x194c   :  { %v2001_v41 = vmul.f32 0.7978846, %v1999_v39  ;;  %v2000_v60 = vadd.f32 %v1998_v40, %v1990_v33 }
0x194e   :  { %2788 = vtanh.f32 %v2001_v41  ;;  %v2002_v42 = vmul.f32 0.7978846, %v2000_v60 }
0x1950   :  { %2790 = vtanh.f32 %v2002_v42 }
0x1958   :  { %v2789_v57 = vpop.eup %2788 }
0x1959   :  { %v2005_v43 = vadd.f32 1.0, %v2789_v57 }
0x195a   :  { %v2791_v45 = vpop.eup %2790 }
0x195b   :  { %v2007_v46 = vmul.f32 0.5, %v2005_v43  ;;  %v2006_v52 = vadd.f32 1.0, %v2791_v45  ;;  %v2396_v45 = vld [vmem:[#allocation19] ss:$0 sm:$0xff] }
0x195d   :  { %v2008_v53 = vmul.f32 0.5, %v2006_v52  ;;  %v2009_v54 = vmul.f32 %v2007_v46, %v1987_v29 }
0x195f   :  { %v2010_v55 = vmul.f32 %v2008_v53, %v1990_v33 }
0x1961   :  { %v2020_v56 = vpack.c.bf16 %v2010_v55, %v2009_v54 }
0x1963   :  { %2648 = vmatmul.mubr.msk.bf16.vlgmr.msra.gmra.mrb[48].mxu1 %vm1186_vm11, %v2020_v56 }
0x1a36   :  { %v2090_v51 = vpop.f32.mrb[48].mxu1 }
0x1a37   :  { %v2091_v61 = vadd.f32 %v2384_v59, %v2090_v51  ;;  %v2649_v44 = vpop.f32.mrb[49].mxu1 }
0x1a38   :  { %v2093_v63 = vpop.f32.mrb[50].mxu1 }
0x1a39   :  { %v2094_v1 = vadd.f32 %v2384_v59, %v2093_v63  ;;  %v2650_v2 = vpop.f32.mrb[51].mxu1  ;;  %v2097_v3 = vadd.f32 %v2091_v61, %v1921_v23  ;;  %v2390_v23 = vld [vmem:[#allocation15 + $0x1] ss:$0 sm:$0xff] }
0x1a3b   :  { %v2103_v5 = vsel %vm336_vm6, %v2097_v3, 0.0  ;;  %v2098_v6 = vadd.f32 %v2094_v1, %v1922_v10 }
0x1a3c   :  { %2104 = vadd.xlane.f32.xlu1 %v2103_v5 }
0x1a3d   :  { %v2106_v7 = vsel %vm336_vm6, %v2098_v6, 0.0 }
0x1a3e   :  { %2107 = vadd.xlane.f32.xlu0 %v2106_v7 }
0x1ac9   :  { %v2105_v8 = vpop.xlane.xlu1 %2104 }
0x1aca   :  { %v2109_v11 = vmul.f32 0.03125, %v2105_v8 }
0x1acb   :  { %v2108_v47 = vpop.xlane.xlu0 %2107 }
0x1acc   :  { %v2111_v48 = vsub.f32 %v2097_v3, %v2109_v11  ;;  %v2110_v12 = vmul.f32 0.03125, %v2108_v47 }
0x1ace   :  { %v2112_v13 = vsub.f32 %v2098_v6, %v2110_v12  ;;  %v2113_v4 = vmul.f32 %v2111_v48, %v2111_v48 }
0x1ad0   :  { %v2115_v14 = vsel %vm336_vm6, %v2113_v4, 0.0  ;;  %v2114_v0 = vmul.f32 %v2112_v13, %v2112_v13 }
0x1ad1   :  { %2116 = vadd.xlane.f32.xlu1 %v2115_v14 }
0x1ad2   :  { %v2118_v15 = vsel %vm336_vm6, %v2114_v0, 0.0 }
0x1ad3   :  { %2119 = vadd.xlane.f32.xlu0 %v2118_v15 }
0x1b5e   :  { %v2117_v18 = vpop.xlane.xlu1 %2116 }
0x1b5f   :  { %v2121_v19 = vmul.f32 0.03125, %v2117_v18 }
0x1b60   :  { %v2120_v24 = vpop.xlane.xlu0 %2119 }
0x1b61   :  { %v2123_v20 = vadd.f32 1e-12, %v2121_v19  ;;  %v2122_v21 = vmul.f32 0.03125, %v2120_v24 }
0x1b63   :  { %2792 = vrsqrt.f32 %v2123_v20  ;;  %v2124_v58 = vadd.f32 1e-12, %v2122_v21 }
0x1b65   :  { %2794 = vrsqrt.f32 %v2124_v58 }
0x1b6d   :  { %v2793_v22 = vpop.eup %2792 }
0x1b6e   :  { %v2127_v10 = vmul.f32 %v2793_v22, %v2111_v48 }
0x1b6f   :  { %v2795_v49 = vpop.eup %2794 }
0x1b70   :  { %v2135_v25 = vmul.f32 %v2390_v23, %v2127_v10  ;;  %v2128_v26 = vmul.f32 %v2795_v49, %v2112_v13 }
0x1b72   :  { %v2143_v27 = vadd.f32 %v2391_v50, %v2135_v25  ;;  %v2136_v28 = vmul.f32 %v2390_v23, %v2128_v26 }
0x1b74   :  { %v2144_v62 = vadd.f32 %v2391_v50, %v2136_v28  ;;  %v2149_v29 = vpack.c.bf16 %v2143_v27, %v2143_v27 }
0x1b76   :  { %v2150_v30 = vpack.c.bf16 %v2144_v62, %v2144_v62  ;;  %v2160_v32 = vunpack.c.l.b16 %v2149_v29 }
0x1b78   :  { %v2161_v31 = vunpack.c.l.b16 %v2150_v30 }
0x1b7a   :  { %v2162_v33 = vrot.slane %v2161_v31, 7 }
0x1b7c   :  { %v2164_v34 = vsel %vm2163_vm12, %v2162_v33, %v2160_v32 }
0x1b7d   :  { %v2165_v35 = vpack.c.b16 %v2164_v34, %v2164_v34 }
0x1b7f   :  { %2656 = vmatmul.mubr.msk.bf16.vlgmr.msra.gmra.mrb[48].mxu0 %vm336_vm6, %v2165_v35 }
0x1b80   :  { %2663 = vmatprep.mubr.msk.bf16.mxu0 %vm3097_vm7, %v3096_v9  ;;  %2660 = vmatpush3.bf16.msra.mxu0 %v2734_v36 }
0x1b81   :  { %2661 = vmatprep.subr.bf16.mxu0 %v3096_v9 }
0x1b84   :  { %2662 = vmatpush3.bf16.msra.mxu0 %v2735_v37 }
0x1c52   :  { %v2215_v39 = vpop.f32.mrb[48].mxu0 }
0x1c53   :  { %v2216_v40 = vadd.f32 %v2392_v38, %v2215_v39  ;;  %v2657_v41 = vpop.f32.mrb[49].mxu0 }
0x1c54   :  { %v2218_v60 = vpop.f32.mrb[50].mxu0 }
0x1c55   :  { %2796 = vtanh.f32 %v2216_v40  ;;  %v2658_v42 = vpop.f32.mrb[51].mxu0 }
0x1c5f   :  { %v2797_v57 = vpop.eup %2796 }
0x1c60   :  { %v2226_v43 = vpack.c.bf16 %v2797_v57, %v2797_v57 }
0x1c62   :  { %2664 = vmatmul.mubr.msk.bf16.vlgmr.msra.gmra.mrb[52].mxu0 %vm336_vm6, %v2226_v43 }
0x1d35   :  { %v2283_v46 = vpop.f32.mrb[52].mxu0 }
0x1d36   :  { %v2284_v52 = vadd.f32 %v2396_v45, %v2283_v46  ;;  %v2665_v9 = vpop.f32.mrb[53].mxu0 }
0x1d37   :  { %v2286_v53 = vpop.f32.mrb[54].mxu0 }
0x1d38   :  { %v2289_v54 = vsub.f32 0.0, %v2284_v52  ;;  %v2666_v55 = vpop.f32.mrb[55].mxu0 }
0x1d3a   :  { %v2290_v56 = vmul.f32 1.442695, %v2289_v54 }
0x1d3c   :  { %2798 = vpow2.f32 %v2290_v56 }
0x1d46   :  { %v2799_v59 = vpop.eup %2798 }
0x1d47   :  { %v2292_v51 = vadd.f32 1.0, %v2799_v59 }
0x1d49   :  { %2800 = vrcp.f32 %v2292_v51 }
0x1d53   :  { %v2801_v61 = vpop.eup %2800 }
0x1d54   :  { %2295 = vst [vmem:[%s3780_s22] sm:$0x3] %v2801_v61 }
0x1d55   :  { %2300 = vsyncpa [#allocation3], 1 }
0x1d56   :  { %2301 = vsyncpa [#allocation5], 1 }
0x1d57   :  { %2302 = vsyncpa [#allocation8], 1 }
0x1d58   :  { %2303 = vsyncpa [#allocation11], 1 }
0x1d59   :  { %2304 = vsyncpa [#allocation14], 1 }
0x1d5a   :  { %2305 = vsyncpa [#allocation17], 1 }
0x1d5b   :  { %2306 = vsyncpa [#allocation20], 1 }

</bundles_post_ra>
